<compile_context>
chip_gen: v7x
topology: tpu7x:2x2x1
jax: 0.10.0
libtpu: 0.0.40
codegen_flags: <defaults>
</compile_context>

<pallas_src>
import functools
import math

import jax
import jax.numpy as jnp
from jax.experimental import pallas as pl
from jax.experimental.pallas import tpu as pltpu


# ----------------------------- small helpers -------------------------------

def _round_up(x, m):
    return (x + m - 1) // m * m


def _layer_norm(x, gamma, beta, eps=1e-5):
    mu = jnp.mean(x, axis=-1, keepdims=True)
    var = jnp.mean((x - mu) ** 2, axis=-1, keepdims=True)
    return (x - mu) * jax.lax.rsqrt(var + eps) * gamma + beta


def _bf16_eup_supported():
    """bf16 transcendentals only pay off on v6e/v7x (v5e & older: keep f32)."""
    try:
        kind = jax.devices()[0].device_kind.lower()
    except Exception:
        return False
    for tag in ("v2", "v3", "v4", "v5"):
        if tag in kind:
            return False
    return True


def _choose_tiling(S, max_tq=128):
    """Pad S to a multiple of the query tile; never fall back to TQ=S for big S."""
    max_tq = max(8, _round_up(max_tq, 8))
    S8 = _round_up(S, 8)
    TQ = min(max_tq, S8)
    S_pad = _round_up(S8, TQ)
    return TQ, S_pad


def _vmem_limit_bytes(S_pad, D, Dff, H, TQ):
    """Derived VMEM request (v7x only has 64 MiB physical -- stay <= ~44 MiB)."""
    lane = 128
    pad = lambda n: _round_up(max(int(n), 1), lane)
    Dh = D // H
    bf16, f32 = 2, 4
    scratch = 3 * H * S_pad * pad(Dh) * bf16                      # head-major Q/K/V
    weights = 2 * bf16 * (D * pad(2 * D) + D * pad(D) + H * Dh * pad(D)
                          + D * pad(Dff) + Dff * pad(D))          # double-buffered
    small = 2 * f32 * (pad(2 * D) + 8 * pad(D) + pad(Dff))        # biases / LN params
    acts = 2 * 2 * S_pad * pad(D) * f32                           # x, pos full blocks
    outb = 2 * TQ * pad(D) * f32
    temps = f32 * (2 * H * TQ * pad(S_pad)                        # scores + probs
                   + H * TQ * pad(Dh)                             # context
                   + TQ * pad(Dff)                                # FFN hidden
                   + 6 * TQ * pad(D))                             # misc per-tile temps
    total = scratch + weights + small + acts + outb + temps + (6 << 20)
    return int(min(max(total, 32 << 20), 44 << 20))


def _cost_estimate(B, S_pad, D, Dff, H):
    flops = 2 * B * S_pad * D * (2 * D + D + D + 2 * Dff) \
            + 2 * B * S_pad * S_pad * D * 2                       # scores + P.V
    transcendentals = B * H * S_pad * S_pad + 8 * B * S_pad       # exp + LN rsqrt
    bytes_accessed = 3 * B * S_pad * D * 4 \
                     + 2 * (D * 2 * D + 2 * D * D + 2 * D * Dff)  # acts f32 + weights bf16
    return pl.CostEstimate(flops=int(flops),
                           transcendentals=int(transcendentals),
                           bytes_accessed=int(bytes_accessed))


# --------------------------- encoder layer kernel --------------------------

def encoder_layer_kernel(xf_ref, posf_ref,
                         wqk_ref, bqk_ref, wv_ref, bv_ref,
                         woh_ref, bo_ref, ln1_ref,
                         w1_ref, b1_ref, w2_ref, b2_ref, ln2_ref, lnf_ref,
                         o_ref,
                         q_s, k_s, v_s,
                         *, num_heads, seq_len, apply_final_norm, exp_bf16):
    H = num_heads
    _, S_pad, Dh = k_s.shape
    D = H * Dh
    TQ = o_ref.shape[1]
    scale = 1.0 / math.sqrt(Dh)
    qi = pl.program_id(1)

    # ---- once per batch element: fused Q|K projection + V projection -------
    # Results are stored head-major (H, S_pad, Dh) so per-tile attention uses
    # contiguous head slabs (no per-head lane slicing in the hot path).
    @pl.when(qi == 0)
    def _():
        xf = xf_ref[0]                        # (S_pad, D) f32
        pf = posf_ref[0]                      # (S_pad, D) f32
        qk_in = (xf + pf).astype(jnp.bfloat16)
        qk = jnp.dot(qk_in, wqk_ref[...],
                     preferred_element_type=jnp.float32) + bqk_ref[0]     # (S, 2D)
        vv = jnp.dot(xf.astype(jnp.bfloat16), wv_ref[...],
                     preferred_element_type=jnp.float32) + bv_ref[0]      # (S, D)
        qmat = (qk[:, :D] * scale).astype(jnp.bfloat16)   # fold 1/sqrt(Dh) once
        kmat = qk[:, D:].astype(jnp.bfloat16)
        vmat = vv.astype(jnp.bfloat16)
        for h in range(H):                    # head split: once per batch element
            lo = h * Dh
            q_s[h] = qmat[:, lo:lo + Dh]
            k_s[h] = kmat[:, lo:lo + Dh]
            v_s[h] = vmat[:, lo:lo + Dh]

    # ---- per query tile -----------------------------------------------------
    row0 = pl.multiple_of(qi * TQ, TQ)
    x_t = xf_ref[0, pl.ds(row0, TQ), :]       # (TQ, D) f32 residual rows (no 2nd DMA)

    qh = q_s[:, pl.ds(row0, TQ), :]           # (H, TQ, Dh) bf16, pre-scaled
    kh = k_s[...]                             # (H, S_pad, Dh)
    vh = v_s[...]                             # (H, S_pad, Dh)

    # Head-batched scores: (H, TQ, S_pad), f32 accumulation.
    s = jax.lax.dot_general(qh, kh, (((2,), (2,)), ((0,), (0,))),
                            preferred_element_type=jnp.float32)
    if seq_len < S_pad:                       # mask zero-padded key columns
        col = jax.lax.broadcasted_iota(jnp.int32, s.shape, 2)
        s = jnp.where(col < seq_len, s, -1e30)
    s = s - jnp.max(s, axis=-1, keepdims=True)
    e = jnp.exp(s.astype(jnp.bfloat16)) if exp_bf16 else jnp.exp(s)
    denom = jnp.sum(e.astype(jnp.float32), axis=-1, keepdims=True)   # f32 denominator
    inv = pl.reciprocal(denom, approx=True)
    p = (e * inv.astype(e.dtype)).astype(jnp.bfloat16)               # (H, TQ, S_pad)

    # Head-batched P.V: (H, TQ, Dh).
    ctx = jax.lax.dot_general(p, vh, (((2,), (1,)), ((0,), (0,))),
                              preferred_element_type=jnp.float32)
    ctx = ctx.astype(jnp.bfloat16)

    # Out-projection: accumulate per-head (TQ,Dh)x(Dh,D) against head-reshaped
    # W_O -- no concat / transpose / scratch round-trip.
    attn = jnp.dot(ctx[0], woh_ref[0], preferred_element_type=jnp.float32)
    for h in range(1, H):
        attn = attn + jnp.dot(ctx[h], woh_ref[h],
                              preferred_element_type=jnp.float32)
    attn = attn + bo_ref[0]

    y1 = _layer_norm(x_t + attn, ln1_ref[0], ln1_ref[1])

    h1 = jnp.maximum(jnp.dot(y1.astype(jnp.bfloat16), w1_ref[...],
                             preferred_element_type=jnp.float32) + b1_ref[0],
                     0.0)
    ffn = jnp.dot(h1.astype(jnp.bfloat16), w2_ref[...],
                  preferred_element_type=jnp.float32) + b2_ref[0]
    y2 = _layer_norm(y1 + ffn, ln2_ref[0], ln2_ref[1])

    if apply_final_norm:                      # fused final encoder LayerNorm
        y2 = _layer_norm(y2, lnf_ref[0], lnf_ref[1])

    o_ref[0] = y2.astype(o_ref.dtype)


# ------------------------------ host wrappers -------------------------------

def encoder_layer_pallas(x, pos, p, num_heads, final_ln=None, max_tq=128):
    B, S, D = x.shape
    H = num_heads
    assert D % H == 0, "embedding dim must be divisible by num_heads"
    Dh = D // H
    Dff = p["w1"].shape[1]

    TQ, S_pad = _choose_tiling(S, max_tq)
    NQ = S_pad // TQ
    apply_final_norm = final_ln is not None
    lnf = final_ln if apply_final_norm else jnp.zeros((2, D), jnp.float32)

    # Zero-pad the sequence so TQ stays large & lane-friendly for awkward S
    # (padded key columns are masked inside the kernel, rows sliced off below).
    if S_pad != S:
        padw = ((0, 0), (0, S_pad - S), (0, 0))
        xp = jnp.pad(x, padw)
        posp = jnp.pad(pos, padw)
    else:
        xp, posp = x, pos

    # bf16 weights for the MXU (biases / LN params stay f32); W_O head-reshaped.
    wqk = p["wqk"].astype(jnp.bfloat16)
    wv = p["wv"].astype(jnp.bfloat16)
    woh = p["wo"].astype(jnp.bfloat16).reshape(H, Dh, D)
    w1 = p["w1"].astype(jnp.bfloat16)
    w2 = p["w2"].astype(jnp.bfloat16)

    kernel = functools.partial(
        encoder_layer_kernel, num_heads=H, seq_len=S,
        apply_final_norm=apply_final_norm, exp_bf16=_bf16_eup_supported())

    def _w_spec(shape):
        # whole (un-tiled) parameter array, identical for every grid step
        return pl.BlockSpec(shape, lambda b, q, _n=len(shape): (0,) * _n)

    full_spec = pl.BlockSpec((1, S_pad, D), lambda b, q: (b, 0, 0))
    out_spec = pl.BlockSpec((1, TQ, D), lambda b, q: (b, q, 0))

    out = pl.pallas_call(
        kernel,
        out_shape=jax.ShapeDtypeStruct((B, S_pad, D), x.dtype),
        grid=(B, NQ),
        in_specs=[
            full_spec, full_spec,             # x full, pos full (single DMA each)
            _w_spec((D, 2 * D)), _w_spec((1, 2 * D)),
            _w_spec((D, D)), _w_spec((1, D)),
            _w_spec((H, Dh, D)), _w_spec((1, D)),
            _w_spec((2, D)),
            _w_spec((D, Dff)), _w_spec((1, Dff)),
            _w_spec((Dff, D)), _w_spec((1, D)),
            _w_spec((2, D)),
            _w_spec((2, D)),
        ],
        out_specs=out_spec,
        scratch_shapes=[
            pltpu.VMEM((H, S_pad, Dh), jnp.bfloat16),   # Q (pre-scaled, head-major)
            pltpu.VMEM((H, S_pad, Dh), jnp.bfloat16),   # K
            pltpu.VMEM((H, S_pad, Dh), jnp.bfloat16),   # V
        ],
        compiler_params=pltpu.CompilerParams(
            dimension_semantics=("parallel", "arbitrary"),
            vmem_limit_bytes=_vmem_limit_bytes(S_pad, D, Dff, H, TQ),
        ),
        cost_estimate=_cost_estimate(B, S_pad, D, Dff, H),
    )(xp, posp,
      wqk, p["bqk"], wv, p["bv"], woh, p["bo"], p["ln1"],
      w1, p["b1"], w2, p["b2"], p["ln2"], lnf)

    if S_pad != S:
        out = out[:, :S, :]
    return out


def transformer_encoder(src, pos, layer_params, norm_params, num_heads,
                        max_tq=128):
    """Mirrors TransformerEncoder.forward (mask / key_padding_mask = None)."""
    output = src
    n = len(layer_params)
    for i, p in enumerate(layer_params):
        fln = norm_params if (norm_params is not None and i == n - 1) else None
        output = encoder_layer_pallas(output, pos, p, num_heads,
                                      final_ln=fln, max_tq=max_tq)
    if norm_params is not None and n == 0:
        output = _layer_norm(output, norm_params[0], norm_params[1])
    return output


# ------------------------- deterministic parameters -------------------------

def init_layer_params(key, D, Dff):
    ks = jax.random.split(key, 6)
    std = 0.02
    # weights stored pre-transposed: (in_features, out_features); Wq and Wk
    # are fused column-wise so q,k come from a single MXU matmul.
    wq = jax.random.normal(ks[0], (D, D), jnp.float32) * std
    wk = jax.random.normal(ks[1], (D, D), jnp.float32) * std
    return {
        "wqk": jnp.concatenate([wq, wk], axis=1),          # (D, 2D)
        "bqk": jnp.zeros((1, 2 * D), jnp.float32),
        "wv": jax.random.normal(ks[2], (D, D), jnp.float32) * std,
        "bv": jnp.zeros((1, D), jnp.float32),
        "wo": jax.random.normal(ks[3], (D, D), jnp.float32) * std,
        "bo": jnp.zeros((1, D), jnp.float32),
        "ln1": jnp.concatenate([jnp.ones((1, D)), jnp.zeros((1, D))], 0).astype(jnp.float32),
        "w1": jax.random.normal(ks[4], (D, Dff), jnp.float32) * std,
        "b1": jnp.zeros((1, Dff), jnp.float32),
        "w2": jax.random.normal(ks[5], (Dff, D), jnp.float32) * std,
        "b2": jnp.zeros((1, D), jnp.float32),
        "ln2": jnp.concatenate([jnp.ones((1, D)), jnp.zeros((1, D))], 0).astype(jnp.float32),
    }


# ------------------------------ pure-JAX reference ---------------------------

def _ref_layer(x, pos, p, H):
    B, S, D = x.shape
    Dh = D // H
    wq, wk = p["wqk"][:, :D], p["wqk"][:, D:]
    bq, bk = p["bqk"][0, :D], p["bqk"][0, D:]
    qk_in = x + pos
    q = qk_in @ wq + bq
    k = qk_in @ wk + bk
    v = x @ p["wv"] + p["bv"][0]

    def heads(t):
        return t.reshape(B, S, H, Dh).transpose(0, 2, 1, 3)

    qh, kh, vh = heads(q) * (1.0 / math.sqrt(Dh)), heads(k), heads(v)
    s = jnp.einsum("bhqd,bhkd->bhqk", qh, kh)
    pmat = jax.nn.softmax(s, axis=-1)
    ctx = jnp.einsum("bhqk,bhkd->bhqd", pmat, vh).transpose(0, 2, 1, 3).reshape(B, S, D)
    attn = ctx @ p["wo"] + p["bo"][0]
    y1 = _layer_norm(x + attn, p["ln1"][0], p["ln1"][1])
    ffn = jnp.maximum(y1 @ p["w1"] + p["b1"][0], 0.0) @ p["w2"] + p["b2"][0]
    return _layer_norm(y1 + ffn, p["ln2"][0], p["ln2"][1])


def _ref_encoder(src, pos, layer_params, norm_params, H):
    out = src
    for p in layer_params:
        out = _ref_layer(out, pos, p, H)
    if norm_params is not None:
        out = _layer_norm(out, norm_params[0], norm_params[1])
    return out


# ----------------------------------- main -----------------------------------

if __name__ == "__main__":
    B, S, D = 2, 20, 32
    NUM_HEADS = 4
    DIM_FF = 64
    NUM_LAYERS = 2

    root = jax.random.PRNGKey(0)
    k_src, k_pos, k_params = jax.random.split(root, 3)
    src = jax.random.normal(k_src, (B, S, D), jnp.float32)
    pos = jax.random.normal(k_pos, (B, S, D), jnp.float32)

    layer_keys = jax.random.split(k_params, NUM_LAYERS)
    layer_params = [init_layer_params(k, D, DIM_FF) for k in layer_keys]
    norm_params = jnp.concatenate(
        [jnp.ones((1, D)), jnp.zeros((1, D))], axis=0).astype(jnp.float32)

    # max_tq=8 at this tiny sequence exercises the multi-tile grid and the
    # padded-key masking path (S=20 -> S_pad=24, 3 query tiles per batch elem);
    # production DETR shapes keep the default max_tq=128 (lane-dense tiles).
    out = transformer_encoder(src, pos, layer_params, norm_params, NUM_HEADS,
                              max_tq=8)
    out = jax.block_until_ready(out)

    ref = _ref_encoder(src, pos, layer_params, norm_params, NUM_HEADS)
    assert out.shape == (B, S, D)
    # bf16 MXU inputs (and bf16 exp on v6e+) in the kernel vs f32 reference
    assert jnp.allclose(out, ref, atol=5e-2, rtol=5e-2), "mismatch vs JAX reference"

    print("KERNEL_OK")
</pallas_src>

<mosaic_0001>
module attributes {stable_mosaic.version = 11 : i64} {
  func.func @encoder_layer_kernel(%arg0: i32, %arg1: i32, %arg2: memref<1x24x32xf32, #tpu.memory_space<vmem>>, %arg3: memref<1x24x32xf32, #tpu.memory_space<vmem>>, %arg4: memref<32x64xbf16, #tpu.memory_space<vmem>>, %arg5: memref<1x64xf32, #tpu.memory_space<vmem>>, %arg6: memref<32x32xbf16, #tpu.memory_space<vmem>>, %arg7: memref<1x32xf32, #tpu.memory_space<vmem>>, %arg8: memref<4x8x32xbf16, #tpu.memory_space<vmem>>, %arg9: memref<1x32xf32, #tpu.memory_space<vmem>>, %arg10: memref<2x32xf32, #tpu.memory_space<vmem>>, %arg11: memref<32x64xbf16, #tpu.memory_space<vmem>>, %arg12: memref<1x64xf32, #tpu.memory_space<vmem>>, %arg13: memref<64x32xbf16, #tpu.memory_space<vmem>>, %arg14: memref<1x32xf32, #tpu.memory_space<vmem>>, %arg15: memref<2x32xf32, #tpu.memory_space<vmem>>, %arg16: memref<2x32xf32, #tpu.memory_space<vmem>>, %arg17: memref<1x8x32xf32, #tpu.memory_space<vmem>>, %arg18: memref<4x24x8xbf16, #tpu.memory_space<vmem>>, %arg19: memref<4x24x8xbf16, #tpu.memory_space<vmem>>, %arg20: memref<4x24x8xbf16, #tpu.memory_space<vmem>>) attributes {dimension_semantics = [#tpu.dimension_semantics<parallel>, #tpu.dimension_semantics<arbitrary>], iteration_bounds = array<i64: 2, 3>, scalar_prefetch = 0 : i64, scratch_operands = 3 : i64, tpu.core_type = #tpu.core_type<tc>, window_params = [{transform_indices = @transform_0, window_bounds = array<i64: 1, 24, 32>}, {transform_indices = @transform_1, window_bounds = array<i64: 1, 24, 32>}, {pipeline_mode = #tpu.pipeline_mode<synchronous>, transform_indices = @transform_2, window_bounds = array<i64: 32, 64>}, {pipeline_mode = #tpu.pipeline_mode<synchronous>, transform_indices = @transform_3, window_bounds = array<i64: 1, 64>}, {pipeline_mode = #tpu.pipeline_mode<synchronous>, transform_indices = @transform_4, window_bounds = array<i64: 32, 32>}, {pipeline_mode = #tpu.pipeline_mode<synchronous>, transform_indices = @transform_5, window_bounds = array<i64: 1, 32>}, {pipeline_mode = #tpu.pipeline_mode<synchronous>, transform_indices = @transform_6, window_bounds = array<i64: 4, 8, 32>}, {pipeline_mode = #tpu.pipeline_mode<synchronous>, transform_indices = @transform_7, window_bounds = array<i64: 1, 32>}, {pipeline_mode = #tpu.pipeline_mode<synchronous>, transform_indices = @transform_8, window_bounds = array<i64: 2, 32>}, {pipeline_mode = #tpu.pipeline_mode<synchronous>, transform_indices = @transform_9, window_bounds = array<i64: 32, 64>}, {pipeline_mode = #tpu.pipeline_mode<synchronous>, transform_indices = @transform_10, window_bounds = array<i64: 1, 64>}, {pipeline_mode = #tpu.pipeline_mode<synchronous>, transform_indices = @transform_11, window_bounds = array<i64: 64, 32>}, {pipeline_mode = #tpu.pipeline_mode<synchronous>, transform_indices = @transform_12, window_bounds = array<i64: 1, 32>}, {pipeline_mode = #tpu.pipeline_mode<synchronous>, transform_indices = @transform_13, window_bounds = array<i64: 2, 32>}, {pipeline_mode = #tpu.pipeline_mode<synchronous>, transform_indices = @transform_14, window_bounds = array<i64: 2, 32>}, {transform_indices = @transform_15, window_bounds = array<i64: 1, 8, 32>}]} {
    %c0_i32 = arith.constant 0 : i32
    %0 = arith.cmpi eq, %arg1, %c0_i32 : i32
    %1 = arith.extui %0 : i1 to i32
    %c0_i32_0 = arith.constant 0 : i32
    %2 = arith.cmpi ne, %1, %c0_i32_0 : i32
    scf.if %2 {
      %c0_61 = arith.constant 0 : index
      %c0_62 = arith.constant 0 : index
      %c0_63 = arith.constant 0 : index
      %140 = vector.load %arg2[%c0_61, %c0_62, %c0_63] : memref<1x24x32xf32, #tpu.memory_space<vmem>>, vector<1x24x32xf32>
      %141 = vector.shape_cast %140 : vector<1x24x32xf32> to vector<24x32xf32>
      %c0_64 = arith.constant 0 : index
      %c0_65 = arith.constant 0 : index
      %c0_66 = arith.constant 0 : index
      %142 = vector.load %arg3[%c0_64, %c0_65, %c0_66] : memref<1x24x32xf32, #tpu.memory_space<vmem>>, vector<1x24x32xf32>
      %143 = vector.shape_cast %142 : vector<1x24x32xf32> to vector<24x32xf32>
      %144 = arith.addf %141, %143 : vector<24x32xf32>
      %145 = arith.truncf %144 : vector<24x32xf32> to vector<24x32xbf16>
      %c0_67 = arith.constant 0 : index
      %c0_68 = arith.constant 0 : index
      %146 = vector.load %arg4[%c0_67, %c0_68] : memref<32x64xbf16, #tpu.memory_space<vmem>>, vector<32x64xbf16>
      %cst_69 = arith.constant dense<0.000000e+00> : vector<24x64xf32>
      %147 = tpu.matmul %145, %146, %cst_69 {dimension_numbers = #tpu.dot_dimension_numbers<[1], [0], [0], [1], [0, 0, 1, 1], [], []>} : vector<24x32xbf16>, vector<32x64xbf16>, vector<24x64xf32> -> vector<24x64xf32>
      %c0_70 = arith.constant 0 : index
      %c0_71 = arith.constant 0 : index
      %148 = vector.load %arg5[%c0_70, %c0_71] : memref<1x64xf32, #tpu.memory_space<vmem>>, vector<1x64xf32>
      %149 = vector.shape_cast %148 : vector<1x64xf32> to vector<64xf32>
      %150 = vector.shape_cast %149 : vector<64xf32> to vector<1x64xf32>
      %151 = vector.broadcast %150 : vector<1x64xf32> to vector<24x64xf32>
      %152 = arith.addf %147, %151 : vector<24x64xf32>
      %153 = arith.truncf %141 : vector<24x32xf32> to vector<24x32xbf16>
      %c0_72 = arith.constant 0 : index
      %c0_73 = arith.constant 0 : index
      %154 = vector.load %arg6[%c0_72, %c0_73] : memref<32x32xbf16, #tpu.memory_space<vmem>>, vector<32x32xbf16>
      %cst_74 = arith.constant dense<0.000000e+00> : vector<24x32xf32>
      %155 = tpu.matmul %153, %154, %cst_74 {dimension_numbers = #tpu.dot_dimension_numbers<[1], [0], [0], [1], [0, 0, 1, 1], [], []>} : vector<24x32xbf16>, vector<32x32xbf16>, vector<24x32xf32> -> vector<24x32xf32>
      %c0_75 = arith.constant 0 : index
      %c0_76 = arith.constant 0 : index
      %156 = vector.load %arg7[%c0_75, %c0_76] : memref<1x32xf32, #tpu.memory_space<vmem>>, vector<1x32xf32>
      %157 = vector.shape_cast %156 : vector<1x32xf32> to vector<32xf32>
      %158 = vector.shape_cast %157 : vector<32xf32> to vector<1x32xf32>
      %159 = vector.broadcast %158 : vector<1x32xf32> to vector<24x32xf32>
      %160 = arith.addf %155, %159 : vector<24x32xf32>
      %161 = vector.extract_strided_slice %152 {offsets = [0, 0], sizes = [24, 32], strides = [1, 1]} : vector<24x64xf32> to vector<24x32xf32>
      %cst_77 = arith.constant 0.353553385 : f32
      %162 = vector.broadcast %cst_77 : f32 to vector<24x32xf32>
      %163 = arith.mulf %161, %162 : vector<24x32xf32>
      %164 = arith.truncf %163 : vector<24x32xf32> to vector<24x32xbf16>
      %165 = vector.extract_strided_slice %152 {offsets = [0, 32], sizes = [24, 32], strides = [1, 1]} : vector<24x64xf32> to vector<24x32xf32>
      %166 = arith.truncf %165 : vector<24x32xf32> to vector<24x32xbf16>
      %167 = arith.truncf %160 : vector<24x32xf32> to vector<24x32xbf16>
      %168 = vector.extract_strided_slice %164 {offsets = [0, 0], sizes = [24, 8], strides = [1, 1]} : vector<24x32xbf16> to vector<24x8xbf16>
      %c0_78 = arith.constant 0 : index
      %c0_79 = arith.constant 0 : index
      %c0_80 = arith.constant 0 : index
      %169 = vector.load %arg18[%c0_78, %c0_79, %c0_80] : memref<4x24x8xbf16, #tpu.memory_space<vmem>>, vector<1x24x8xbf16>
      %170 = vector.shape_cast %169 : vector<1x24x8xbf16> to vector<24x8xbf16>
      %171 = vector.shape_cast %168 : vector<24x8xbf16> to vector<1x24x8xbf16>
      tpu.vector_store %arg18[%c0_78, %c0_79, %c0_80], %171 {strides = array<i32>} : memref<4x24x8xbf16, #tpu.memory_space<vmem>>, vector<1x24x8xbf16>,
      %172 = vector.extract_strided_slice %166 {offsets = [0, 0], sizes = [24, 8], strides = [1, 1]} : vector<24x32xbf16> to vector<24x8xbf16>
      %c0_81 = arith.constant 0 : index
      %c0_82 = arith.constant 0 : index
      %c0_83 = arith.constant 0 : index
      %173 = vector.load %arg19[%c0_81, %c0_82, %c0_83] : memref<4x24x8xbf16, #tpu.memory_space<vmem>>, vector<1x24x8xbf16>
      %174 = vector.shape_cast %173 : vector<1x24x8xbf16> to vector<24x8xbf16>
      %175 = vector.shape_cast %172 : vector<24x8xbf16> to vector<1x24x8xbf16>
      tpu.vector_store %arg19[%c0_81, %c0_82, %c0_83], %175 {strides = array<i32>} : memref<4x24x8xbf16, #tpu.memory_space<vmem>>, vector<1x24x8xbf16>,
      %176 = vector.extract_strided_slice %167 {offsets = [0, 0], sizes = [24, 8], strides = [1, 1]} : vector<24x32xbf16> to vector<24x8xbf16>
      %c0_84 = arith.constant 0 : index
      %c0_85 = arith.constant 0 : index
      %c0_86 = arith.constant 0 : index
      %177 = vector.load %arg20[%c0_84, %c0_85, %c0_86] : memref<4x24x8xbf16, #tpu.memory_space<vmem>>, vector<1x24x8xbf16>
      %178 = vector.shape_cast %177 : vector<1x24x8xbf16> to vector<24x8xbf16>
      %179 = vector.shape_cast %176 : vector<24x8xbf16> to vector<1x24x8xbf16>
      tpu.vector_store %arg20[%c0_84, %c0_85, %c0_86], %179 {strides = array<i32>} : memref<4x24x8xbf16, #tpu.memory_space<vmem>>, vector<1x24x8xbf16>,
      %180 = vector.extract_strided_slice %164 {offsets = [0, 8], sizes = [24, 8], strides = [1, 1]} : vector<24x32xbf16> to vector<24x8xbf16>
      %c1_87 = arith.constant 1 : index
      %c0_88 = arith.constant 0 : index
      %c0_89 = arith.constant 0 : index
      %181 = vector.load %arg18[%c1_87, %c0_88, %c0_89] : memref<4x24x8xbf16, #tpu.memory_space<vmem>>, vector<1x24x8xbf16>
      %182 = vector.shape_cast %181 : vector<1x24x8xbf16> to vector<24x8xbf16>
      %183 = vector.shape_cast %180 : vector<24x8xbf16> to vector<1x24x8xbf16>
      tpu.vector_store %arg18[%c1_87, %c0_88, %c0_89], %183 {strides = array<i32>} : memref<4x24x8xbf16, #tpu.memory_space<vmem>>, vector<1x24x8xbf16>,
      %184 = vector.extract_strided_slice %166 {offsets = [0, 8], sizes = [24, 8], strides = [1, 1]} : vector<24x32xbf16> to vector<24x8xbf16>
      %c1_90 = arith.constant 1 : index
      %c0_91 = arith.constant 0 : index
      %c0_92 = arith.constant 0 : index
      %185 = vector.load %arg19[%c1_90, %c0_91, %c0_92] : memref<4x24x8xbf16, #tpu.memory_space<vmem>>, vector<1x24x8xbf16>
      %186 = vector.shape_cast %185 : vector<1x24x8xbf16> to vector<24x8xbf16>
      %187 = vector.shape_cast %184 : vector<24x8xbf16> to vector<1x24x8xbf16>
      tpu.vector_store %arg19[%c1_90, %c0_91, %c0_92], %187 {strides = array<i32>} : memref<4x24x8xbf16, #tpu.memory_space<vmem>>, vector<1x24x8xbf16>,
      %188 = vector.extract_strided_slice %167 {offsets = [0, 8], sizes = [24, 8], strides = [1, 1]} : vector<24x32xbf16> to vector<24x8xbf16>
      %c1_93 = arith.constant 1 : index
      %c0_94 = arith.constant 0 : index
      %c0_95 = arith.constant 0 : index
      %189 = vector.load %arg20[%c1_93, %c0_94, %c0_95] : memref<4x24x8xbf16, #tpu.memory_space<vmem>>, vector<1x24x8xbf16>
      %190 = vector.shape_cast %189 : vector<1x24x8xbf16> to vector<24x8xbf16>
      %191 = vector.shape_cast %188 : vector<24x8xbf16> to vector<1x24x8xbf16>
      tpu.vector_store %arg20[%c1_93, %c0_94, %c0_95], %191 {strides = array<i32>} : memref<4x24x8xbf16, #tpu.memory_space<vmem>>, vector<1x24x8xbf16>,
      %192 = vector.extract_strided_slice %164 {offsets = [0, 16], sizes = [24, 8], strides = [1, 1]} : vector<24x32xbf16> to vector<24x8xbf16>
      %c2_96 = arith.constant 2 : index
      %c0_97 = arith.constant 0 : index
      %c0_98 = arith.constant 0 : index
      %193 = vector.load %arg18[%c2_96, %c0_97, %c0_98] : memref<4x24x8xbf16, #tpu.memory_space<vmem>>, vector<1x24x8xbf16>
      %194 = vector.shape_cast %193 : vector<1x24x8xbf16> to vector<24x8xbf16>
      %195 = vector.shape_cast %192 : vector<24x8xbf16> to vector<1x24x8xbf16>
      tpu.vector_store %arg18[%c2_96, %c0_97, %c0_98], %195 {strides = array<i32>} : memref<4x24x8xbf16, #tpu.memory_space<vmem>>, vector<1x24x8xbf16>,
      %196 = vector.extract_strided_slice %166 {offsets = [0, 16], sizes = [24, 8], strides = [1, 1]} : vector<24x32xbf16> to vector<24x8xbf16>
      %c2_99 = arith.constant 2 : index
      %c0_100 = arith.constant 0 : index
      %c0_101 = arith.constant 0 : index
      %197 = vector.load %arg19[%c2_99, %c0_100, %c0_101] : memref<4x24x8xbf16, #tpu.memory_space<vmem>>, vector<1x24x8xbf16>
      %198 = vector.shape_cast %197 : vector<1x24x8xbf16> to vector<24x8xbf16>
      %199 = vector.shape_cast %196 : vector<24x8xbf16> to vector<1x24x8xbf16>
      tpu.vector_store %arg19[%c2_99, %c0_100, %c0_101], %199 {strides = array<i32>} : memref<4x24x8xbf16, #tpu.memory_space<vmem>>, vector<1x24x8xbf16>,
      %200 = vector.extract_strided_slice %167 {offsets = [0, 16], sizes = [24, 8], strides = [1, 1]} : vector<24x32xbf16> to vector<24x8xbf16>
      %c2_102 = arith.constant 2 : index
      %c0_103 = arith.constant 0 : index
      %c0_104 = arith.constant 0 : index
      %201 = vector.load %arg20[%c2_102, %c0_103, %c0_104] : memref<4x24x8xbf16, #tpu.memory_space<vmem>>, vector<1x24x8xbf16>
      %202 = vector.shape_cast %201 : vector<1x24x8xbf16> to vector<24x8xbf16>
      %203 = vector.shape_cast %200 : vector<24x8xbf16> to vector<1x24x8xbf16>
      tpu.vector_store %arg20[%c2_102, %c0_103, %c0_104], %203 {strides = array<i32>} : memref<4x24x8xbf16, #tpu.memory_space<vmem>>, vector<1x24x8xbf16>,
      %204 = vector.extract_strided_slice %164 {offsets = [0, 24], sizes = [24, 8], strides = [1, 1]} : vector<24x32xbf16> to vector<24x8xbf16>
      %c3_105 = arith.constant 3 : index
      %c0_106 = arith.constant 0 : index
      %c0_107 = arith.constant 0 : index
      %205 = vector.load %arg18[%c3_105, %c0_106, %c0_107] : memref<4x24x8xbf16, #tpu.memory_space<vmem>>, vector<1x24x8xbf16>
      %206 = vector.shape_cast %205 : vector<1x24x8xbf16> to vector<24x8xbf16>
      %207 = vector.shape_cast %204 : vector<24x8xbf16> to vector<1x24x8xbf16>
      tpu.vector_store %arg18[%c3_105, %c0_106, %c0_107], %207 {strides = array<i32>} : memref<4x24x8xbf16, #tpu.memory_space<vmem>>, vector<1x24x8xbf16>,
      %208 = vector.extract_strided_slice %166 {offsets = [0, 24], sizes = [24, 8], strides = [1, 1]} : vector<24x32xbf16> to vector<24x8xbf16>
      %c3_108 = arith.constant 3 : index
      %c0_109 = arith.constant 0 : index
      %c0_110 = arith.constant 0 : index
      %209 = vector.load %arg19[%c3_108, %c0_109, %c0_110] : memref<4x24x8xbf16, #tpu.memory_space<vmem>>, vector<1x24x8xbf16>
      %210 = vector.shape_cast %209 : vector<1x24x8xbf16> to vector<24x8xbf16>
      %211 = vector.shape_cast %208 : vector<24x8xbf16> to vector<1x24x8xbf16>
      tpu.vector_store %arg19[%c3_108, %c0_109, %c0_110], %211 {strides = array<i32>} : memref<4x24x8xbf16, #tpu.memory_space<vmem>>, vector<1x24x8xbf16>,
      %212 = vector.extract_strided_slice %167 {offsets = [0, 24], sizes = [24, 8], strides = [1, 1]} : vector<24x32xbf16> to vector<24x8xbf16>
      %c3_111 = arith.constant 3 : index
      %c0_112 = arith.constant 0 : index
      %c0_113 = arith.constant 0 : index
      %213 = vector.load %arg20[%c3_111, %c0_112, %c0_113] : memref<4x24x8xbf16, #tpu.memory_space<vmem>>, vector<1x24x8xbf16>
      %214 = vector.shape_cast %213 : vector<1x24x8xbf16> to vector<24x8xbf16>
      %215 = vector.shape_cast %212 : vector<24x8xbf16> to vector<1x24x8xbf16>
      tpu.vector_store %arg20[%c3_111, %c0_112, %c0_113], %215 {strides = array<i32>} : memref<4x24x8xbf16, #tpu.memory_space<vmem>>, vector<1x24x8xbf16>,
    } else {
    }
    %c8_i32 = arith.constant 8 : i32
    %3 = arith.muli %arg1, %c8_i32 : i32
    %4 = tpu.assume_multiple %3, 8 : i32
    %c0 = arith.constant 0 : index
    %5 = arith.index_cast %4 : i32 to index
    %c0_1 = arith.constant 0 : index
    %6 = vector.load %arg2[%c0, %5, %c0_1] : memref<1x24x32xf32, #tpu.memory_space<vmem>>, vector<1x8x32xf32>
    %7 = vector.shape_cast %6 : vector<1x8x32xf32> to vector<8x32xf32>
    %c0_2 = arith.constant 0 : index
    %8 = arith.index_cast %4 : i32 to index
    %c0_3 = arith.constant 0 : index
    %9 = vector.load %arg18[%c0_2, %8, %c0_3] : memref<4x24x8xbf16, #tpu.memory_space<vmem>>, vector<4x8x8xbf16>
    %c0_4 = arith.constant 0 : index
    %c0_5 = arith.constant 0 : index
    %c0_6 = arith.constant 0 : index
    %10 = vector.load %arg19[%c0_4, %c0_5, %c0_6] : memref<4x24x8xbf16, #tpu.memory_space<vmem>>, vector<4x24x8xbf16>
    %c0_7 = arith.constant 0 : index
    %c0_8 = arith.constant 0 : index
    %c0_9 = arith.constant 0 : index
    %11 = vector.load %arg20[%c0_7, %c0_8, %c0_9] : memref<4x24x8xbf16, #tpu.memory_space<vmem>>, vector<4x24x8xbf16>
    %cst = arith.constant dense<0.000000e+00> : vector<4x8x24xf32>
    %12 = tpu.matmul %9, %10, %cst {dimension_numbers = #tpu.dot_dimension_numbers<[2], [2], [1], [1], [0, 0, 0, 1, 1, 1], [0], [0]>} : vector<4x8x8xbf16>, vector<4x24x8xbf16>, vector<4x8x24xf32> -> vector<4x8x24xf32>
    %13 = tpu.iota {dimensions = array<i32: 2>} : vector<4x8x24xi32>
    %c20_i32 = arith.constant 20 : i32
    %14 = vector.broadcast %c20_i32 : i32 to vector<4x8x24xi32>
    %15 = arith.cmpi slt, %13, %14 : vector<4x8x24xi32>
    %cst_10 = arith.constant -1.000000e+30 : f32
    %16 = vector.broadcast %cst_10 : f32 to vector<4x8x24xf32>
    %17 = arith.select %15, %12, %16 : vector<4x8x24xi1>, vector<4x8x24xf32>
    %cst_11 = arith.constant dense<0xFF800000> : vector<4x8xf32>
    %18 = vector.multi_reduction <maximumf>, %17, %cst_11 [2] : vector<4x8x24xf32> to vector<4x8xf32>
    %19 = vector.shape_cast %18 : vector<4x8xf32> to vector<4x8x1xf32>
    %20 = vector.broadcast %19 : vector<4x8x1xf32> to vector<4x8x24xf32>
    %21 = arith.subf %17, %20 : vector<4x8x24xf32>
    %22 = arith.truncf %21 : vector<4x8x24xf32> to vector<4x8x24xbf16>
    %23 = math.exp %22 : vector<4x8x24xbf16>
    %24 = arith.extf %23 : vector<4x8x24xbf16> to vector<4x8x24xf32>
    %cst_12 = arith.constant dense<0.000000e+00> : vector<4x8xf32>
    %25 = vector.multi_reduction <add>, %24, %cst_12 [2] : vector<4x8x24xf32> to vector<4x8xf32>
    %26 = vector.shape_cast %25 : vector<4x8xf32> to vector<4x8x1xf32>
    %27 = tpu.reciprocal %26 {approx = true} : vector<4x8x1xf32> -> vector<4x8x1xf32>
    %28 = arith.truncf %27 : vector<4x8x1xf32> to vector<4x8x1xbf16>
    %29 = vector.broadcast %28 : vector<4x8x1xbf16> to vector<4x8x24xbf16>
    %30 = arith.mulf %23, %29 : vector<4x8x24xbf16>
    %cst_13 = arith.constant dense<0.000000e+00> : vector<4x8x8xf32>
    %31 = tpu.matmul %30, %11, %cst_13 {dimension_numbers = #tpu.dot_dimension_numbers<[2], [1], [1], [2], [0, 0, 0, 1, 1, 2], [0], [0]>} : vector<4x8x24xbf16>, vector<4x24x8xbf16>, vector<4x8x8xf32> -> vector<4x8x8xf32>
    %32 = arith.truncf %31 : vector<4x8x8xf32> to vector<4x8x8xbf16>
    %33 = vector.extract_strided_slice %32 {offsets = [0, 0, 0], sizes = [1, 8, 8], strides = [1, 1, 1]} : vector<4x8x8xbf16> to vector<1x8x8xbf16>
    %34 = vector.shape_cast %33 : vector<1x8x8xbf16> to vector<8x8xbf16>
    %c0_14 = arith.constant 0 : index
    %c0_15 = arith.constant 0 : index
    %c0_16 = arith.constant 0 : index
    %35 = vector.load %arg8[%c0_14, %c0_15, %c0_16] : memref<4x8x32xbf16, #tpu.memory_space<vmem>>, vector<1x8x32xbf16>
    %36 = vector.shape_cast %35 : vector<1x8x32xbf16> to vector<8x32xbf16>
    %cst_17 = arith.constant dense<0.000000e+00> : vector<8x32xf32>
    %37 = tpu.matmul %34, %36, %cst_17 {dimension_numbers = #tpu.dot_dimension_numbers<[1], [0], [0], [1], [0, 0, 1, 1], [], []>} : vector<8x8xbf16>, vector<8x32xbf16>, vector<8x32xf32> -> vector<8x32xf32>
    %38 = vector.extract_strided_slice %32 {offsets = [1, 0, 0], sizes = [1, 8, 8], strides = [1, 1, 1]} : vector<4x8x8xbf16> to vector<1x8x8xbf16>
    %39 = vector.shape_cast %38 : vector<1x8x8xbf16> to vector<8x8xbf16>
    %c1 = arith.constant 1 : index
    %c0_18 = arith.constant 0 : index
    %c0_19 = arith.constant 0 : index
    %40 = vector.load %arg8[%c1, %c0_18, %c0_19] : memref<4x8x32xbf16, #tpu.memory_space<vmem>>, vector<1x8x32xbf16>
    %41 = vector.shape_cast %40 : vector<1x8x32xbf16> to vector<8x32xbf16>
    %cst_20 = arith.constant dense<0.000000e+00> : vector<8x32xf32>
    %42 = tpu.matmul %39, %41, %cst_20 {dimension_numbers = #tpu.dot_dimension_numbers<[1], [0], [0], [1], [0, 0, 1, 1], [], []>} : vector<8x8xbf16>, vector<8x32xbf16>, vector<8x32xf32> -> vector<8x32xf32>
    %43 = arith.addf %37, %42 : vector<8x32xf32>
    %44 = vector.extract_strided_slice %32 {offsets = [2, 0, 0], sizes = [1, 8, 8], strides = [1, 1, 1]} : vector<4x8x8xbf16> to vector<1x8x8xbf16>
    %45 = vector.shape_cast %44 : vector<1x8x8xbf16> to vector<8x8xbf16>
    %c2 = arith.constant 2 : index
    %c0_21 = arith.constant 0 : index
    %c0_22 = arith.constant 0 : index
    %46 = vector.load %arg8[%c2, %c0_21, %c0_22] : memref<4x8x32xbf16, #tpu.memory_space<vmem>>, vector<1x8x32xbf16>
    %47 = vector.shape_cast %46 : vector<1x8x32xbf16> to vector<8x32xbf16>
    %cst_23 = arith.constant dense<0.000000e+00> : vector<8x32xf32>
    %48 = tpu.matmul %45, %47, %cst_23 {dimension_numbers = #tpu.dot_dimension_numbers<[1], [0], [0], [1], [0, 0, 1, 1], [], []>} : vector<8x8xbf16>, vector<8x32xbf16>, vector<8x32xf32> -> vector<8x32xf32>
    %49 = arith.addf %43, %48 : vector<8x32xf32>
    %50 = vector.extract_strided_slice %32 {offsets = [3, 0, 0], sizes = [1, 8, 8], strides = [1, 1, 1]} : vector<4x8x8xbf16> to vector<1x8x8xbf16>
    %51 = vector.shape_cast %50 : vector<1x8x8xbf16> to vector<8x8xbf16>
    %c3 = arith.constant 3 : index
    %c0_24 = arith.constant 0 : index
    %c0_25 = arith.constant 0 : index
    %52 = vector.load %arg8[%c3, %c0_24, %c0_25] : memref<4x8x32xbf16, #tpu.memory_space<vmem>>, vector<1x8x32xbf16>
    %53 = vector.shape_cast %52 : vector<1x8x32xbf16> to vector<8x32xbf16>
    %cst_26 = arith.constant dense<0.000000e+00> : vector<8x32xf32>
    %54 = tpu.matmul %51, %53, %cst_26 {dimension_numbers = #tpu.dot_dimension_numbers<[1], [0], [0], [1], [0, 0, 1, 1], [], []>} : vector<8x8xbf16>, vector<8x32xbf16>, vector<8x32xf32> -> vector<8x32xf32>
    %55 = arith.addf %49, %54 : vector<8x32xf32>
    %c0_27 = arith.constant 0 : index
    %c0_28 = arith.constant 0 : index
    %56 = vector.load %arg9[%c0_27, %c0_28] : memref<1x32xf32, #tpu.memory_space<vmem>>, vector<1x32xf32>
    %57 = vector.shape_cast %56 : vector<1x32xf32> to vector<32xf32>
    %58 = vector.shape_cast %57 : vector<32xf32> to vector<1x32xf32>
    %59 = vector.broadcast %58 : vector<1x32xf32> to vector<8x32xf32>
    %60 = arith.addf %55, %59 : vector<8x32xf32>
    %61 = arith.addf %7, %60 : vector<8x32xf32>
    %c0_29 = arith.constant 0 : index
    %c0_30 = arith.constant 0 : index
    %62 = vector.load %arg10[%c0_29, %c0_30] : memref<2x32xf32, #tpu.memory_space<vmem>>, vector<1x32xf32>
    %63 = vector.shape_cast %62 : vector<1x32xf32> to vector<32xf32>
    %c1_31 = arith.constant 1 : index
    %c0_32 = arith.constant 0 : index
    %64 = vector.load %arg10[%c1_31, %c0_32] : memref<2x32xf32, #tpu.memory_space<vmem>>, vector<1x32xf32>
    %65 = vector.shape_cast %64 : vector<1x32xf32> to vector<32xf32>
    %cst_33 = arith.constant dense<0.000000e+00> : vector<8xf32>
    %66 = vector.multi_reduction <add>, %61, %cst_33 [1] : vector<8x32xf32> to vector<8xf32>
    %67 = vector.shape_cast %66 : vector<8xf32> to vector<8x1xf32>
    %cst_34 = arith.constant 3.200000e+01 : f32
    %68 = vector.broadcast %cst_34 : f32 to vector<8x1xf32>
    %69 = arith.divf %67, %68 : vector<8x1xf32>
    %70 = vector.broadcast %69 : vector<8x1xf32> to vector<8x32xf32>
    %71 = arith.subf %61, %70 : vector<8x32xf32>
    %72 = arith.mulf %71, %71 : vector<8x32xf32>
    %cst_35 = arith.constant dense<0.000000e+00> : vector<8xf32>
    %73 = vector.multi_reduction <add>, %72, %cst_35 [1] : vector<8x32xf32> to vector<8xf32>
    %74 = vector.shape_cast %73 : vector<8xf32> to vector<8x1xf32>
    %cst_36 = arith.constant 3.200000e+01 : f32
    %75 = vector.broadcast %cst_36 : f32 to vector<8x1xf32>
    %76 = arith.divf %74, %75 : vector<8x1xf32>
    %77 = vector.broadcast %69 : vector<8x1xf32> to vector<8x32xf32>
    %78 = arith.subf %61, %77 : vector<8x32xf32>
    %cst_37 = arith.constant 9.99999974E-6 : f32
    %79 = vector.broadcast %cst_37 : f32 to vector<8x1xf32>
    %80 = arith.addf %76, %79 : vector<8x1xf32>
    %81 = math.rsqrt %80 : vector<8x1xf32>
    %82 = vector.broadcast %81 : vector<8x1xf32> to vector<8x32xf32>
    %83 = arith.mulf %78, %82 : vector<8x32xf32>
    %84 = vector.shape_cast %63 : vector<32xf32> to vector<1x32xf32>
    %85 = vector.broadcast %84 : vector<1x32xf32> to vector<8x32xf32>
    %86 = arith.mulf %83, %85 : vector<8x32xf32>
    %87 = vector.shape_cast %65 : vector<32xf32> to vector<1x32xf32>
    %88 = vector.broadcast %87 : vector<1x32xf32> to vector<8x32xf32>
    %89 = arith.addf %86, %88 : vector<8x32xf32>
    %90 = arith.truncf %89 : vector<8x32xf32> to vector<8x32xbf16>
    %c0_38 = arith.constant 0 : index
    %c0_39 = arith.constant 0 : index
    %91 = vector.load %arg11[%c0_38, %c0_39] : memref<32x64xbf16, #tpu.memory_space<vmem>>, vector<32x64xbf16>
    %cst_40 = arith.constant dense<0.000000e+00> : vector<8x64xf32>
    %92 = tpu.matmul %90, %91, %cst_40 {dimension_numbers = #tpu.dot_dimension_numbers<[1], [0], [0], [1], [0, 0, 1, 1], [], []>} : vector<8x32xbf16>, vector<32x64xbf16>, vector<8x64xf32> -> vector<8x64xf32>
    %c0_41 = arith.constant 0 : index
    %c0_42 = arith.constant 0 : index
    %93 = vector.load %arg12[%c0_41, %c0_42] : memref<1x64xf32, #tpu.memory_space<vmem>>, vector<1x64xf32>
    %94 = vector.shape_cast %93 : vector<1x64xf32> to vector<64xf32>
    %95 = vector.shape_cast %94 : vector<64xf32> to vector<1x64xf32>
    %96 = vector.broadcast %95 : vector<1x64xf32> to vector<8x64xf32>
    %97 = arith.addf %92, %96 : vector<8x64xf32>
    %cst_43 = arith.constant 0.000000e+00 : f32
    %98 = vector.broadcast %cst_43 : f32 to vector<8x64xf32>
    %99 = arith.maximumf %97, %98 : vector<8x64xf32>
    %100 = arith.truncf %99 : vector<8x64xf32> to vector<8x64xbf16>
    %c0_44 = arith.constant 0 : index
    %c0_45 = arith.constant 0 : index
    %101 = vector.load %arg13[%c0_44, %c0_45] : memref<64x32xbf16, #tpu.memory_space<vmem>>, vector<64x32xbf16>
    %cst_46 = arith.constant dense<0.000000e+00> : vector<8x32xf32>
    %102 = tpu.matmul %100, %101, %cst_46 {dimension_numbers = #tpu.dot_dimension_numbers<[1], [0], [0], [1], [0, 0, 1, 1], [], []>} : vector<8x64xbf16>, vector<64x32xbf16>, vector<8x32xf32> -> vector<8x32xf32>
    %c0_47 = arith.constant 0 : index
    %c0_48 = arith.constant 0 : index
    %103 = vector.load %arg14[%c0_47, %c0_48] : memref<1x32xf32, #tpu.memory_space<vmem>>, vector<1x32xf32>
    %104 = vector.shape_cast %103 : vector<1x32xf32> to vector<32xf32>
    %105 = vector.shape_cast %104 : vector<32xf32> to vector<1x32xf32>
    %106 = vector.broadcast %105 : vector<1x32xf32> to vector<8x32xf32>
    %107 = arith.addf %102, %106 : vector<8x32xf32>
    %108 = arith.addf %89, %107 : vector<8x32xf32>
    %c0_49 = arith.constant 0 : index
    %c0_50 = arith.constant 0 : index
    %109 = vector.load %arg15[%c0_49, %c0_50] : memref<2x32xf32, #tpu.memory_space<vmem>>, vector<1x32xf32>
    %110 = vector.shape_cast %109 : vector<1x32xf32> to vector<32xf32>
    %c1_51 = arith.constant 1 : index
    %c0_52 = arith.constant 0 : index
    %111 = vector.load %arg15[%c1_51, %c0_52] : memref<2x32xf32, #tpu.memory_space<vmem>>, vector<1x32xf32>
    %112 = vector.shape_cast %111 : vector<1x32xf32> to vector<32xf32>
    %cst_53 = arith.constant dense<0.000000e+00> : vector<8xf32>
    %113 = vector.multi_reduction <add>, %108, %cst_53 [1] : vector<8x32xf32> to vector<8xf32>
    %114 = vector.shape_cast %113 : vector<8xf32> to vector<8x1xf32>
    %cst_54 = arith.constant 3.200000e+01 : f32
    %115 = vector.broadcast %cst_54 : f32 to vector<8x1xf32>
    %116 = arith.divf %114, %115 : vector<8x1xf32>
    %117 = vector.broadcast %116 : vector<8x1xf32> to vector<8x32xf32>
    %118 = arith.subf %108, %117 : vector<8x32xf32>
    %119 = arith.mulf %118, %118 : vector<8x32xf32>
    %cst_55 = arith.constant dense<0.000000e+00> : vector<8xf32>
    %120 = vector.multi_reduction <add>, %119, %cst_55 [1] : vector<8x32xf32> to vector<8xf32>
    %121 = vector.shape_cast %120 : vector<8xf32> to vector<8x1xf32>
    %cst_56 = arith.constant 3.200000e+01 : f32
    %122 = vector.broadcast %cst_56 : f32 to vector<8x1xf32>
    %123 = arith.divf %121, %122 : vector<8x1xf32>
    %124 = vector.broadcast %116 : vector<8x1xf32> to vector<8x32xf32>
    %125 = arith.subf %108, %124 : vector<8x32xf32>
    %cst_57 = arith.constant 9.99999974E-6 : f32
    %126 = vector.broadcast %cst_57 : f32 to vector<8x1xf32>
    %127 = arith.addf %123, %126 : vector<8x1xf32>
    %128 = math.rsqrt %127 : vector<8x1xf32>
    %129 = vector.broadcast %128 : vector<8x1xf32> to vector<8x32xf32>
    %130 = arith.mulf %125, %129 : vector<8x32xf32>
    %131 = vector.shape_cast %110 : vector<32xf32> to vector<1x32xf32>
    %132 = vector.broadcast %131 : vector<1x32xf32> to vector<8x32xf32>
    %133 = arith.mulf %130, %132 : vector<8x32xf32>
    %134 = vector.shape_cast %112 : vector<32xf32> to vector<1x32xf32>
    %135 = vector.broadcast %134 : vector<1x32xf32> to vector<8x32xf32>
    %136 = arith.addf %133, %135 : vector<8x32xf32>
    %c0_58 = arith.constant 0 : index
    %c0_59 = arith.constant 0 : index
    %c0_60 = arith.constant 0 : index
    %137 = vector.load %arg17[%c0_58, %c0_59, %c0_60] : memref<1x8x32xf32, #tpu.memory_space<vmem>>, vector<1x8x32xf32>
    %138 = vector.shape_cast %137 : vector<1x8x32xf32> to vector<8x32xf32>
    %139 = vector.shape_cast %136 : vector<8x32xf32> to vector<1x8x32xf32>
    tpu.vector_store %arg17[%c0_58, %c0_59, %c0_60], %139 {strides = array<i32>} : memref<1x8x32xf32, #tpu.memory_space<vmem>>, vector<1x8x32xf32>,
    return
  }
  func.func @transform_0(%arg0: i32, %arg1: i32) -> (i32, i32, i32) {
    %c0_i32 = arith.constant 0 : i32
    %c0_i32_0 = arith.constant 0 : i32
    %c0_i32_1 = arith.constant 0 : i32
    return %arg0, %c0_i32, %c0_i32_0 : i32, i32, i32
  }
  func.func @transform_1(%arg0: i32, %arg1: i32) -> (i32, i32, i32) {
    %c0_i32 = arith.constant 0 : i32
    %c0_i32_0 = arith.constant 0 : i32
    %c0_i32_1 = arith.constant 0 : i32
    return %arg0, %c0_i32, %c0_i32_0 : i32, i32, i32
  }
  func.func @transform_2(%arg0: i32, %arg1: i32) -> (i32, i32) {
    %c0_i32 = arith.constant 0 : i32
    %c0_i32_0 = arith.constant 0 : i32
    %c0_i32_1 = arith.constant 0 : i32
    return %c0_i32, %c0_i32_0 : i32, i32
  }
  func.func @transform_3(%arg0: i32, %arg1: i32) -> (i32, i32) {
    %c0_i32 = arith.constant 0 : i32
    %c0_i32_0 = arith.constant 0 : i32
    %c0_i32_1 = arith.constant 0 : i32
    return %c0_i32, %c0_i32_0 : i32, i32
  }
  func.func @transform_4(%arg0: i32, %arg1: i32) -> (i32, i32) {
    %c0_i32 = arith.constant 0 : i32
    %c0_i32_0 = arith.constant 0 : i32
    %c0_i32_1 = arith.constant 0 : i32
    return %c0_i32, %c0_i32_0 : i32, i32
  }
  func.func @transform_5(%arg0: i32, %arg1: i32) -> (i32, i32) {
    %c0_i32 = arith.constant 0 : i32
    %c0_i32_0 = arith.constant 0 : i32
    %c0_i32_1 = arith.constant 0 : i32
    return %c0_i32, %c0_i32_0 : i32, i32
  }
  func.func @transform_6(%arg0: i32, %arg1: i32) -> (i32, i32, i32) {
    %c0_i32 = arith.constant 0 : i32
    %c0_i32_0 = arith.constant 0 : i32
    %c0_i32_1 = arith.constant 0 : i32
    %c0_i32_2 = arith.constant 0 : i32
    return %c0_i32, %c0_i32_0, %c0_i32_1 : i32, i32, i32
  }
  func.func @transform_7(%arg0: i32, %arg1: i32) -> (i32, i32) {
    %c0_i32 = arith.constant 0 : i32
    %c0_i32_0 = arith.constant 0 : i32
    %c0_i32_1 = arith.constant 0 : i32
    return %c0_i32, %c0_i32_0 : i32, i32
  }
  func.func @transform_8(%arg0: i32, %arg1: i32) -> (i32, i32) {
    %c0_i32 = arith.constant 0 : i32
    %c0_i32_0 = arith.constant 0 : i32
    %c0_i32_1 = arith.constant 0 : i32
    return %c0_i32, %c0_i32_0 : i32, i32
  }
  func.func @transform_9(%arg0: i32, %arg1: i32) -> (i32, i32) {
    %c0_i32 = arith.constant 0 : i32
    %c0_i32_0 = arith.constant 0 : i32
    %c0_i32_1 = arith.constant 0 : i32
    return %c0_i32, %c0_i32_0 : i32, i32
  }
  func.func @transform_10(%arg0: i32, %arg1: i32) -> (i32, i32) {
    %c0_i32 = arith.constant 0 : i32
    %c0_i32_0 = arith.constant 0 : i32
    %c0_i32_1 = arith.constant 0 : i32
    return %c0_i32, %c0_i32_0 : i32, i32
  }
  func.func @transform_11(%arg0: i32, %arg1: i32) -> (i32, i32) {
    %c0_i32 = arith.constant 0 : i32
    %c0_i32_0 = arith.constant 0 : i32
    %c0_i32_1 = arith.constant 0 : i32
    return %c0_i32, %c0_i32_0 : i32, i32
  }
  func.func @transform_12(%arg0: i32, %arg1: i32) -> (i32, i32) {
    %c0_i32 = arith.constant 0 : i32
    %c0_i32_0 = arith.constant 0 : i32
    %c0_i32_1 = arith.constant 0 : i32
    return %c0_i32, %c0_i32_0 : i32, i32
  }
  func.func @transform_13(%arg0: i32, %arg1: i32) -> (i32, i32) {
    %c0_i32 = arith.constant 0 : i32
    %c0_i32_0 = arith.constant 0 : i32
    %c0_i32_1 = arith.constant 0 : i32
    return %c0_i32, %c0_i32_0 : i32, i32
  }
  func.func @transform_14(%arg0: i32, %arg1: i32) -> (i32, i32) {
    %c0_i32 = arith.constant 0 : i32
    %c0_i32_0 = arith.constant 0 : i32
    %c0_i32_1 = arith.constant 0 : i32
    return %c0_i32, %c0_i32_0 : i32, i32
  }
  func.func @transform_15(%arg0: i32, %arg1: i32) -> (i32, i32, i32) {
    %c0_i32 = arith.constant 0 : i32
    %c0_i32_0 = arith.constant 0 : i32
    return %arg0, %arg1, %c0_i32 : i32, i32, i32
  }
}

</mosaic_0001>

<bundles_post_ra>
// kernel: tpu_custom_call.1
= control target key start
LH: loop header
LB: loop body
LE: loop exit
PB: predicated region body
PF: predicated region fallthrough
CT: control target
= control target key end

     0   :  { %s3676_s0 = inlined_call_operand.vmem [shape: f32[2,24,32], index: 0, kind: input, shape index: {}]   ;;  %s3677_s1 = inlined_call_operand.hbm [shape: f32[2,24,32], index: 1, kind: input, shape index: {}]   ;;  %s3678_s2 = inlined_call_operand.hbm [shape: bf16[32,64], index: 2, kind: input, shape index: {}]   ;;  %s3679_s3 = inlined_call_operand.hbm [shape: f32[1,64], index: 3, kind: input, shape index: {}]   ;;  %s3680_s4 = inlined_call_operand.hbm [shape: bf16[32,32], index: 4, kind: input, shape index: {}]   ;;  %s3681_s5 = inlined_call_operand.hbm [shape: f32[1,32], index: 5, kind: input, shape index: {}]   ;;  %s3682_s6 = inlined_call_operand.hbm [shape: bf16[4,8,32], index: 6, kind: input, shape index: {}]   ;;  %s3683_s7 = inlined_call_operand.hbm [shape: f32[1,32], index: 7, kind: input, shape index: {}]   ;;  %s3684_s8 = inlined_call_operand.vmem [shape: f32[2,32], index: 8, kind: input, shape index: {}]   ;;  %s3685_s9 = inlined_call_operand.vmem [shape: bf16[32,64], index: 9, kind: input, shape index: {}]   ;;  %s3686_s10 = inlined_call_operand.vmem [shape: f32[1,64], index: 10, kind: input, shape index: {}]   ;;  %s3687_s11 = inlined_call_operand.vmem [shape: bf16[64,32], index: 11, kind: input, shape index: {}]   ;;  %s3688_s12 = inlined_call_operand.vmem [shape: f32[1,32], index: 12, kind: input, shape index: {}]   ;;  %s3689_s13 = inlined_call_operand.vmem [shape: f32[2,32], index: 13, kind: input, shape index: {}]   ;;  %s3690_s14 = inlined_call_operand.vmem [shape: f32[2,32], index: 14, kind: input, shape index: {}]   ;;  %s3691_s15 = inlined_call_operand.hbm [shape: f32[2,24,32], index: 15, kind: output, shape index: {}]  }
   0x1   :  { %3709 = sst [smem:[#allocation28_spill]] %s3676_s0 }
   0x2   :  { %3710 = sst [smem:[#allocation29_spill]] %s3677_s1 }
   0x3   :  { %3711 = sst [smem:[#allocation30_spill]] %s3678_s2 }
   0x4   :  { %3712 = sst [smem:[#allocation31_spill]] %s3679_s3 }
   0x5   :  { %3713 = sst [smem:[#allocation32_spill]] %s3680_s4 }
   0x6   :  { %3714 = sst [smem:[#allocation33_spill]] %s3681_s5 }
   0x7   :  { %3715 = sst [smem:[#allocation34_spill]] %s3682_s6 }
   0x8   :  { %3716 = sst [smem:[#allocation35_spill]] %s3683_s7 }
   0x9   :  { %3717 = sst [smem:[#allocation36_spill]] %s3684_s8 }
   0xa   :  { %3718 = sst [smem:[#allocation37_spill]] %s3685_s9 }
   0xb   :  { %3719 = sst [smem:[#allocation38_spill]] %s3686_s10 }
   0xc   :  { %3720 = sst [smem:[#allocation39_spill]] %s3687_s11 }
   0xd   :  { %3721 = sst [smem:[#allocation40_spill]] %s3688_s12 }
   0xe   :  { %3722 = sst [smem:[#allocation41_spill]] %s3689_s13 }
   0xf   :  { %3723 = sst [smem:[#allocation42_spill]] %s3691_s15 }
  0x10   :  { %20 = vsyncpa [#allocation6], 0 }
  0x11   :  { %22 = vsyncpa [#allocation6 + $0x1], 0 }
  0x12   :  { %23 = vsyncpa [#allocation9], 0 }
  0x13   :  { %24 = vsyncpa [#allocation12], 0 }
  0x14   :  { %25 = vsyncpa [#allocation15], 0 }
  0x15   :  { %26 = vsyncpa [#allocation7], 0 }
  0x16   :  { %28 = vsyncpa [#allocation7 + $0x1], 0  ;;  %s3045_s18 = smov 0   ;;  %s3047_s19 = smov 0  }
  0x17   :  { %s3049_s20 = smov 0   ;;  %s3051_s21 = smov 0  }
  0x18   :  { %s3053_s22 = smov 0   ;;  %s3055_s14 = smov 0  }
  0x19   :  { %s3057_s23 = smov 0   ;;  %s3059_s24 = smov 0  }
  0x1a   :  { %s3061_s25 = smov 0   ;;  %s3063_s26 = smov 0  }
  0x1b   :  { %s3065_s27 = smov 0  }
  0x1c LB: > { %3724 = sst [smem:[#allocation23_spill]] %s2902_s18  ;;  %s2113_s28 = sadd.s32 4294967295, %s2942_s27   ;;  %s2942_s27 = sphi %s3065_s27, %s34_s27   ;;  %s2938_s26 = sphi %s3063_s26, %s3780_s26   ;;  %s2934_s25 = sphi %s3061_s25, %s3779_s25   ;;  %s2930_s24 = sphi %s3059_s24, %s3778_s24   ;;  %s2926_s23 = sphi %s3057_s23, %s3777_s23   ;;  %s2922_s14 = sphi %s3055_s14, %s3776_s14   ;;  %s2918_s22 = sphi %s3053_s22, %s3775_s22   ;;  %s2914_s21 = sphi %s3051_s21, %s3774_s21   ;;  %s2910_s20 = sphi %s3049_s20, %s3773_s20   ;;  %s2906_s19 = sphi %s3047_s19, %s3772_s19   ;;  %s2902_s18 = sphi %s3045_s18, %s3771_s18  }
  0x1d   : > { %3725 = sst [smem:[#allocation24_spill]] %s2926_s23  ;;  %p2115_p0 = scmp.ge.s32.totalorder %s2942_s27, 1 }
  0x1e   : > { %3726 = sst [smem:[#allocation25_spill]] %s2930_s24  ;;  %p3102_p1 = scmp.eq.s32.totalorder %s2113_s28, 0 }
  0x1f   : > { %p3106_p2 = scmp.eq.s32.totalorder %s2113_s28, 5  ;;  %p404_p3 = scmp.lt.s32.totalorder %s2942_s27, 7 }
  0x20   : > { %s3727_s29 = scalar_select %p3102_p1, 1, 0 }
  0x21   : > { %s3728_s30 = scalar_select %p3106_p2, 1, 0 }
  0x22   : > { %p3111_p4 = pnand %p2115_p0, %p404_p3  ;;  %s2944_s17 = smov [#allocation8]  }
  0x23   : > { %3729 = sst [smem:[#allocation26_spill]] %s3728_s30  ;;  %s416_s15 = sshll.u32 %s2944_s17, 4  ;;  %s3115_s15 = int_to_ptr.vmem [resolvable:$true] %s416_s15 }
  0x24   : > { %s3730_s16 = scalar_select %p3111_p4, 1, 0 }
  0x25   : > { %p2416_p5 = pneg %p3111_p4  ;;  %s2945_s28 = smov [#allocation11]  }
  0x26   : > { %3731 = sst [smem:[#allocation27_spill]] %s3730_s16  ;;  %s440_s12 = sshll.u32 %s2945_s28, 4  ;;  %s3125_s12 = int_to_ptr.vmem [resolvable:$true] %s440_s12 }
  0x27   : > { %p3121_p6 = pnand %p2416_p5, %p3102_p1  ;;  %s2946_s10 = smov [#allocation14]  }
  0x28   : > { %s464_s8 = sshll.u32 %s2946_s10, 4  ;;  %s3733_s2 = sld [smem:[#allocation30_spill]]  ;;  %s3127_s8 = int_to_ptr.vmem [resolvable:$true] %s464_s8 }
  0x29   : > { %p3137_p8 = pneg %p3121_p6 }
  0x2e   : > { %s2610_s9 = scalar_lea.hbm %s3733_s2, 256 }
  0x2f   : > { %p2611_p7 = scmp.ne.s32.totalorder %s3733_s2, %s2610_s9  ;;  %p2617_p11 = scmp.lt.u32.totalorder %s2610_s9, %s3733_s2 }
  0x31   : > { %p2613_p9 = pnand %p3137_p8, %p2611_p7 }
  0x33   : > { %p2614_p10 = pneg %p2613_p9 }
  0x35   : > { %p2619_p12 = pnand %p2617_p11, %p2614_p10 }
  0x37   : > { %2622 = shalt.err (!%p2619_p12)
}
  0x38   : > { %s2623_s0 = scalar_lea.vmem %s3115_s15, 256  ;;  %p2631_p5 = scmp.lt.s32.totalorder %s3115_s15, %s3115_s15 }
  0x39   : > { %p2624_p13 = scmp.ne.s32.totalorder %s3115_s15, %s2623_s0  ;;  %p2632_p4 = scmp.lt.s32.totalorder %s2623_s0, %s2623_s0 }
  0x3b   : > { %p2626_p0 = pnand %p2624_p13, %p3137_p8  ;;  %p2633_p7 = por %p2632_p4, %p2631_p5 }
  0x3d   : > { %p2627_p3 = pneg %p2626_p0 }
  0x3f   : > { %p2634_p9 = pnand %p2633_p7, %p2627_p3 }
  0x41   : > { %2637 = shalt.err (!%p2634_p9)
}
  0x42   : > { %s2947_s11 = smov 64   ;;  %s2948_s9 = smov 4  }
  0x43   : > { %2419 = dma.hbm_to_vmem [thread:$0]  (!%p3121_p6), %s3733_s2, 256, %s3115_s15, [#allocation9], %s2947_s11, %s2947_s11, %s2948_s9  }
  0x44   : > { %s3735_s4 = sld [smem:[#allocation32_spill]] }
  0x4a   : > { %s2638_s0 = scalar_lea.hbm %s3735_s4, 256 }
  0x4b   : > { %p2639_p4 = scmp.ne.s32.totalorder %s3735_s4, %s2638_s0  ;;  %p2645_p12 = scmp.lt.u32.totalorder %s2638_s0, %s3735_s4 }
  0x4d   : > { %p2641_p10 = pnand %p2639_p4, %p3137_p8 }
  0x4f   : > { %p2642_p11 = pneg %p2641_p10 }
  0x51   : > { %p2647_p13 = pnand %p2645_p12, %p2642_p11 }
  0x53   : > { %2650 = shalt.err (!%p2647_p13)
}
  0x54   : > { %s2651_s15 = scalar_lea.vmem %s3125_s12, 256  ;;  %p2659_p7 = scmp.lt.s32.totalorder %s3125_s12, %s3125_s12 }
  0x55   : > { %p2652_p0 = scmp.ne.s32.totalorder %s3125_s12, %s2651_s15  ;;  %p2660_p9 = scmp.lt.s32.totalorder %s2651_s15, %s2651_s15 }
  0x57   : > { %p2654_p3 = pnand %p2652_p0, %p3137_p8  ;;  %p2661_p4 = por %p2660_p9, %p2659_p7 }
  0x59   : > { %p2655_p5 = pneg %p2654_p3 }
  0x5b   : > { %p2662_p10 = pnand %p2661_p4, %p2655_p5 }
  0x5d   : > { %2665 = shalt.err (!%p2662_p10)
}
  0x5e   : > { %2425 = dma.hbm_to_vmem [thread:$0]  (!%p3121_p6), %s3735_s4, 256, %s3125_s12, [#allocation12], %s2947_s11, %s2947_s11, %s2948_s9  }
  0x5f   : > { %s3736_s6 = sld [smem:[#allocation34_spill]] }
  0x65   : > { %s2666_s23 = scalar_lea.hbm %s3736_s6, 256 }
  0x66   : > { %p2667_p11 = scmp.ne.s32.totalorder %s3736_s6, %s2666_s23  ;;  %p2673_p0 = scmp.lt.u32.totalorder %s2666_s23, %s3736_s6 }
  0x68   : > { %p2669_p12 = pnand %p2667_p11, %p3137_p8 }
  0x6a   : > { %p2670_p13 = pneg %p2669_p12 }
  0x6c   : > { %p2675_p3 = pnand %p2673_p0, %p2670_p13 }
  0x6e   : > { %2678 = shalt.err (!%p2675_p3)
}
  0x6f   : > { %s2679_s12 = scalar_lea.vmem %s3127_s8, 256  ;;  %p2687_p4 = scmp.lt.s32.totalorder %s3127_s8, %s3127_s8 }
  0x70   : > { %p2680_p5 = scmp.ne.s32.totalorder %s3127_s8, %s2679_s12  ;;  %p2688_p10 = scmp.lt.s32.totalorder %s2679_s12, %s2679_s12 }
  0x72   : > { %p2682_p7 = pnand %p2680_p5, %p3137_p8  ;;  %p2689_p11 = por %p2688_p10, %p2687_p4 }
  0x74   : > { %p2683_p9 = pneg %p2682_p7 }
  0x76   : > { %p2690_p12 = pnand %p2689_p11, %p2683_p9 }
  0x78   : > { %2693 = shalt.err (!%p2690_p12)
}
  0x79   : > { %2431 = dma.hbm_to_vmem [thread:$0]  (!%p3121_p6), %s3736_s6, 256, %s3127_s8, [#allocation15], %s2947_s11, %s2947_s11, %s2948_s9  }
  0x7a   : > { %s2949_s18 = smov [#allocation10]   ;;  %s2950_s16 = smov [#allocation13]  }
  0x7b   : > { %s430_s30 = sshll.u32 %s2949_s18, 4  ;;  %s454_s23 = sshll.u32 %s2950_s16, 4  ;;  %s431_s30 = int_to_ptr.vmem [resolvable:$true] %s430_s30  ;;  %s3213_s23 = int_to_ptr.vmem [resolvable:$true] %s454_s23 }
  0x7c   : > { %s3737_s3 = sld [smem:[#allocation31_spill]] }
  0x82   : > { %s2694_s28 = scalar_lea.hbm %s3737_s3, 16 }
  0x83   : > { %p2695_p13 = scmp.ne.s32.totalorder %s3737_s3, %s2694_s28  ;;  %p2701_p5 = scmp.lt.u32.totalorder %s2694_s28, %s3737_s3 }
  0x85   : > { %p2697_p0 = pnand %p2695_p13, %p3137_p8 }
  0x87   : > { %p2698_p3 = pneg %p2697_p0 }
  0x89   : > { %p2703_p7 = pnand %p2701_p5, %p2698_p3 }
  0x8b   : > { %2706 = shalt.err (!%p2703_p7)
}
  0x8c   : > { %s2707_s11 = scalar_lea.vmem %s431_s30, 16  ;;  %s2714_s9 = scalar_lea.vmem %s431_s30, 32 }
  0x8d   : > { %p2708_p9 = scmp.ne.s32.totalorder %s431_s30, %s2707_s11  ;;  %p2715_p11 = scmp.lt.s32.totalorder %s431_s30, %s431_s30 }
  0x8e   : > { %p2716_p12 = scmp.lt.s32.totalorder %s2714_s9, %s2707_s11 }
  0x8f   : > { %p2710_p4 = pnand %p2708_p9, %p3137_p8 }
  0x90   : > { %p2717_p2 = por %p2716_p12, %p2715_p11 }
  0x91   : > { %p2711_p10 = pneg %p2710_p4 }
  0x93   : > { %p2718_p1 = pnand %p2717_p2, %p2711_p10 }
  0x95   : > { %2721 = shalt.err (!%p2718_p1)
}
  0x96   : > { %2422 = dma.hbm_to_vmem [thread:$0]  (!%p3121_p6), %s3737_s3, 16, %s431_s30, [#allocation9]  }
  0x97   : > { %s3738_s5 = sld [smem:[#allocation33_spill]] }
  0x9d   : > { %s2722_s10 = scalar_lea.hbm %s3738_s5, 16 }
  0x9e   : > { %p2723_p13 = scmp.ne.s32.totalorder %s3738_s5, %s2722_s10  ;;  %p2729_p1 = scmp.lt.u32.totalorder %s2722_s10, %s3738_s5 }
  0xa0   : > { %p2725_p0 = pnand %p2723_p13, %p3137_p8 }
  0xa2   : > { %p2726_p3 = pneg %p2725_p0 }
  0xa4   : > { %p2731_p2 = pnand %p2729_p1, %p2726_p3 }
  0xa6   : > { %2734 = shalt.err (!%p2731_p2)
}
  0xa7   : > { %s2735_s30 = scalar_lea.vmem %s3213_s23, 16  ;;  %s2742_s8 = scalar_lea.vmem %s3213_s23, 32 }
  0xa8   : > { %p2736_p5 = scmp.ne.s32.totalorder %s3213_s23, %s2735_s30  ;;  %p2743_p4 = scmp.lt.s32.totalorder %s3213_s23, %s3213_s23 }
  0xa9   : > { %p2744_p10 = scmp.lt.s32.totalorder %s2742_s8, %s2735_s30 }
  0xaa   : > { %p2738_p7 = pnand %p2736_p5, %p3137_p8 }
  0xab   : > { %p2745_p11 = por %p2744_p10, %p2743_p4 }
  0xac   : > { %p2739_p9 = pneg %p2738_p7 }
  0xae   : > { %p2746_p12 = pnand %p2745_p11, %p2739_p9 }
  0xb0   : > { %2749 = shalt.err (!%p2746_p12)
}
  0xb1   : > { %2428 = dma.hbm_to_vmem [thread:$0]  (!%p3121_p6), %s3738_s5, 16, %s3213_s23, [#allocation12]  }
  0xb2   : > { %s2951_s1 = smov [#allocation16]   ;;  %s3739_s7 = sld [smem:[#allocation35_spill]] }
  0xb3   : > { %s478_s18 = sshll.u32 %s2951_s1, 4  ;;  %s479_s18 = int_to_ptr.vmem [resolvable:$true] %s478_s18 }
  0xb8   : > { %s2750_s10 = scalar_lea.hbm %s3739_s7, 16 }
  0xb9   : > { %p2751_p13 = scmp.ne.s32.totalorder %s3739_s7, %s2750_s10  ;;  %p2757_p1 = scmp.lt.u32.totalorder %s2750_s10, %s3739_s7 }
  0xbb   : > { %p2753_p0 = pnand %p2751_p13, %p3137_p8 }
  0xbd   : > { %p2754_p3 = pneg %p2753_p0 }
  0xbf   : > { %p2759_p2 = pnand %p2757_p1, %p2754_p3 }
  0xc1   : > { %2762 = shalt.err (!%p2759_p2)
}
  0xc2   : > { %s2763_s23 = scalar_lea.vmem %s479_s18, 16  ;;  %s2770_s30 = scalar_lea.vmem %s479_s18, 32 }
  0xc3   : > { %p2764_p5 = scmp.ne.s32.totalorder %s479_s18, %s2763_s23  ;;  %p2771_p4 = scmp.lt.s32.totalorder %s479_s18, %s479_s18 }
  0xc4   : > { %p2772_p10 = scmp.lt.s32.totalorder %s2770_s30, %s2763_s23 }
  0xc5   : > { %p2766_p7 = pnand %p2764_p5, %p3137_p8 }
  0xc6   : > { %p2773_p11 = por %p2772_p10, %p2771_p4 }
  0xc7   : > { %p2767_p9 = pneg %p2766_p7 }
  0xc9   : > { %p2774_p12 = pnand %p2773_p11, %p2767_p9 }
  0xcb   : > { %2777 = shalt.err (!%p2774_p12)
}
  0xcc   : > { %2434 = dma.hbm_to_vmem [thread:$0]  (!%p3121_p6), %s3739_s7, 16, %s479_s18, [#allocation15]  }
  0xcd   : > { %s2114_s24 = sadd.s32 4294967294, %s2942_s27   ;;  %s43_s13 = sadd.s32 1, %s2934_s25 }
  0xce   : > { %s3740_s9 = sld [smem:[#allocation23_spill]]  ;;  %s46_s1 = sadd.s32 1, %s2938_s26 }
  0xcf   : > { %p44_p8 = scmp.ge.s32.totalorder %s43_s13, 3  ;;  %s79_s16 = sadd.s32 1, %s2922_s14 }
  0xd0   : > { %p86_p13 = scmp.ne.s32.totalorder %s2922_s14, %s2918_s22  ;;  %p87_p0 = scmp.eq.s32.totalorder %s2942_s27, 0 }
  0xd1   : > { %s3782_s13 = smov (%p44_p8, %s43_s13), 0  ;;  %s3741_s17 = sld [smem:[#allocation26_spill]] }
  0xd2   : > { %s3784_s1 = smov (!%p44_p8, %s46_s1), %s2938_s26  ;;  %p3285_p3 = por %p87_p0, %p86_p13 }
  0xd3   : > { %p92_p6 = scmp.ne.s32.totalorder %s2918_s22, %s2914_s21  ;;  %p48_p1 = scmp.ge.s32.totalorder %s3784_s1, 2 }
  0xd4   : > { %s376_s10 = ssub.s32 %s2934_s25, %s3782_s13  ;;  %p3743_p2 = scmp.ne.s32.totalorder %s3727_s29, 0 }
  0xd5   : > { %s380_s0 = sadd.s32 1, %s2910_s20  ;;  %s3786_s1 = smov (%p48_p1, %s3784_s1), 0 }
  0xd6   : > { %p3295_p5 = por %p3743_p2, %p92_p6  ;;  %p390_p7 = scmp.ne.s32.totalorder %s2910_s20, %s2906_s19 }
  0xd7   : > { %p396_p9 = scmp.ne.s32.totalorder %s2906_s19, %s3740_s9  ;;  %s76_s12 = ssub.s32 %s2938_s26, %s3786_s1 }
  0xd8   : > { %p397_p4 = scmp.eq.s32.totalorder %s2114_s24, 5  ;;  %p77_p10 = scmp.eq.s32.totalorder %s76_s12, 0 }
  0xd9   : > { %s377_s21 = sor.u32 %s376_s10, %s76_s12  ;;  %p3745_p12 = scmp.ne.s32.totalorder %s3741_s17, 0 }
  0xda   : > { %p378_p11 = scmp.eq.s32.totalorder %s377_s21, 0  ;;  %p3320_p13 = por %p397_p4, %p396_p9 }
  0xdb   : > { %p3310_p8 = por %p3745_p12, %p390_p7  ;;  %p2449_p0 = scmp.lt.s32.totalorder %s2942_s27, 6 }
  0xdc   : > { %s3315_s23 = scalar_select %p77_p10, %s2922_s14, %s79_s16  }
  0xdd   : > { %s3746_s15 = scalar_select %p3310_p8, 1, 0 }
  0xde   : > { %s3318_s30 = scalar_select %p378_p11, %s2910_s20, %s380_s0  }
  0xdf   : > { %s3747_s8 = scalar_select %p3320_p13, 1, 0 }
  0xe0   : > { %s518_s11 = sand.u32 1, %s2922_s14   ;;  %s2384_s9 = smul.u32 384, %s2938_s26 }
  0xe1   : > { %s2383_s24 = smul.u32 24, %s518_s11  ;;  %s3748_s12 = sld [smem:[#allocation29_spill]] }
  0xe2   : > { %p3334_p6 = pnand %p2449_p0, %p3285_p3  ;;  %s3340_s3 = scalar_lea.sflag [#allocation6], %s518_s11 }
  0xe3   : > { %s522_s0 = scalar_lea.vmem [#allocation5], %s2383_s24 }
  0xe4   : > { %s529_s21 = sshll.u32 %s522_s0, 4  ;;  %p2780_p2 = pneg %p3334_p6  ;;  %s3338_s21 = int_to_ptr.vmem [resolvable:$true] %s529_s21 }
  0xe7   : > { %s3330_s17 = scalar_lea.hbm %s3748_s12, %s2384_s9  ;;  %s2783_s10 = scalar_lea.hbm %s3748_s12, 768 }
  0xe8   : > { %s2778_s2 = scalar_lea.hbm %s3330_s17, 384  ;;  %p2784_p3 = scmp.lt.u32.totalorder %s3330_s17, %s3748_s12 }
  0xe9   : > { %p2779_p1 = scmp.ne.s32.totalorder %s3330_s17, %s2778_s2  ;;  %p2785_p4 = scmp.lt.u32.totalorder %s2783_s10, %s2778_s2 }
  0xea   : > { %p2787_p11 = scmp.lt.u32.totalorder %s2778_s2, %s3330_s17 }
  0xeb   : > { %p2781_p7 = pnand %p2780_p2, %p2779_p1  ;;  %p2786_p10 = por %p2785_p4, %p2784_p3 }
  0xed   : > { %p2782_p9 = pneg %p2781_p7  ;;  %p2788_p12 = por %p2787_p11, %p2786_p10 }
  0xef   : > { %p2789_p0 = pnand %p2788_p12, %p2782_p9 }
  0xf1   : > { %2792 = shalt.err (!%p2789_p0)
}
  0xf2   : > { %s2793_s11 = scalar_lea.vmem %s3338_s21, 384  ;;  %s2952_s24 = smov [#allocation5]  }
  0xf3   : > { %p2794_p1 = scmp.ne.s32.totalorder %s3338_s21, %s2793_s11  ;;  %s2798_s0 = sshll.u32 %s2952_s24, 4  ;;  %s2799_s0 = int_to_ptr.vmem [resolvable:$false] %s2798_s0 }
  0xf4   : > { %s2800_s4 = scalar_lea.vmem %s2799_s0, 768  ;;  %p2801_p8 = scmp.lt.s32.totalorder %s3338_s21, %s2799_s0 }
  0xf5   : > { %p2796_p7 = pnand %p2794_p1, %p2780_p2  ;;  %p2802_p3 = scmp.lt.s32.totalorder %s2800_s4, %s2793_s11 }
  0xf7   : > { %p2797_p13 = pneg %p2796_p7  ;;  %p2803_p4 = por %p2802_p3, %p2801_p8 }
  0xf9   : > { %p2804_p10 = pnand %p2803_p4, %p2797_p13 }
  0xfb   : > { %2807 = shalt.err (!%p2804_p10)
}
  0xfc   : > { %s2953_s5 = smov 128   ;;  %s2954_s2 = smov 8  }
  0xfd   : > { %2438 = dma.hbm_to_vmem [thread:$0]  (!%p3334_p6), %s3330_s17, 384, %s3338_s21, %s3340_s3, %s2953_s5, %s2953_s5, %s2954_s2  }
  0xfe   : > { %s3750_s18 = sld [smem:[#allocation27_spill]] }
 0x104   : > { %p3751_p2 = scmp.ne.s32.totalorder %s3750_s18, 0 }
 0x105   : > { %s543_s9 = sand.u32 (!%p3751_p2), 1, %s2918_s22  }
 0x106   : > { %541 = sbr.rel (%p3751_p2) target bundleno = 2762 (0xaca), region = 80  ;;  %s544_s24 = scalar_lea.sflag (!%p3751_p2), [#allocation6], %s543_s9 }
 0x107   : > { %s2385_s10 = smul.u32 (!%p3751_p2), 24, %s543_s9 }
 0x109   : > { %s3371_s11 = scalar_lea.vmem (!%p3751_p2), [#allocation5], %s2385_s10 }
 0x10d   : > { %2881 = dma.done.wait (%p3295_p5), %s544_s24, 384  }
 0x10e   : > { %2883 = vsyncadd (%p3295_p5), %s544_s24, 4294966912  ;;  %p3752_p8 = scmp.ne.s32.totalorder %s3727_s29, 0 }
 0x110   : > { %2885 = dma.done.wait (%p3752_p8), [#allocation9], 272  }
 0x111   : > { %2887 = vsyncadd (%p3752_p8), [#allocation9], 4294967024 }
 0x112   : > { %2889 = dma.done.wait (%p3752_p8), [#allocation12], 272  }
 0x113   : > { %2891 = vsyncadd (%p3752_p8), [#allocation12], 4294967024 }
 0x114   : > { %2893 = dma.done.wait (%p3752_p8), [#allocation15], 272  }
 0x115   : > { %2895 = vsyncadd (%p3752_p8), [#allocation15], 4294967024  ;;  %s3753_s3 = sld [smem:[#allocation25_spill]]  ;;  %s3706_s28 = sand.u32 1, %s2906_s19  }
 0x116   : > { %s3393_s17 = sshll.u32 %s3706_s28, 3  ;;  %s3754_s4 = sld [smem:[#allocation28_spill]] }
 0x117   : > { %s622_s2 = scalar_lea.vmem [#allocation17], %s3393_s17  ;;  %s3755_s29 = sld [smem:[#allocation24_spill]] }
 0x11b   : > { %p623_p5 = scmp.lt.s32.totalorder %s3753_s3, 1 }
 0x11d   : > { %s3788_s3 = smov (!%p623_p5, %s3753_s3), 1  ;;  %p2133_p13 = scmp.ne.s32.totalorder %s3755_s29, 0 }
 0x11e   : > { %s2386_s16 = smul.u32 24, %s3788_s3  ;;  %v2564_v0 = vld [vmem:[#allocation8] sm:$0xff] (!%p2133_p13)   ;;  %v2565_v1 = vld [vmem:[#allocation11] sm:$0xff] (!%p2133_p13)   ;;  %v2566_v2 = vld [vmem:[#allocation8 + $0x8] sm:$0xff] (!%p2133_p13)   ;;  %vm667_vm0 = vcmask (!%p2133_p13), 261120   ;;  %vm821_vm1 = vcmask (!%p2133_p13), 60416  }
 0x11f   : > { %632 = sbr.rel (%p2133_p13) target bundleno = 683 (0x2ab), region = 112  ;;  %2259 = vmatprep.subr.bf16.mxu0 (!%p2133_p13), %v2564_v0  ;;  %2267 = vmatprep.subr.bf16.mxu1 (!%p2133_p13), %v2565_v1  ;;  %v2567_v3 = vld [vmem:[#allocation11 + $0x8] sm:$0xff] (!%p2133_p13)   ;;  %v636_v6 = vld [vmem:[%s3371_s11] sm:$0xff] (!%p2133_p13)  ;;  %v2139_v18 = vld [vmem:[#allocation13] ss:$0 sm:$0xff] (!%p2133_p13)  ;;  %s2955_s18 = smov (!%p2133_p13), 88  }
 0x120   : > { %s3399_s5 = scalar_lea.vmem %s3754_s4, %s2386_s16  ;;  %2260 = vmatpush3.bf16.msra.mxu0 (!%p2133_p13), %v2564_v0  ;;  %2268 = vmatpush3.bf16.msra.mxu1 (!%p2133_p13), %v2565_v1  ;;  %v637_v7 = vld [vmem:[%s3371_s11 + $0x8] sm:$0xff] (!%p2133_p13)  ;;  %v638_v10 = vld [vmem:[%s3371_s11 + $0x10] sm:$0xff] (!%p2133_p13)  ;;  %s2956_s9 = smov (!%p2133_p13), 96  }
 0x121   : > { %2261 = vmatprep.subr.bf16.mxu0 (!%p2133_p13), %v2566_v2  ;;  %v633_v4 = vld [vmem:[%s3399_s5] sm:$0xff] (!%p2133_p13)  ;;  %v634_v5 = vld [vmem:[%s3399_s5 + $0x8] sm:$0xff] (!%p2133_p13)  ;;  %2269 = vmatprep.subr.bf16.mxu1 (!%p2133_p13), %v2567_v3  ;;  %v635_v9 = vld [vmem:[%s3399_s5 + $0x10] sm:$0xff] (!%p2133_p13)  ;;  %s2957_s10 = smov (!%p2133_p13), 112   ;;  %s2958_s24 = smov (!%p2133_p13), 120  }
 0x122   : > { %v639_v8 = vadd.f32 (!%p2133_p13), %v636_v6, %v633_v4  ;;  %v722_v11 = vpack.c.bf16 (!%p2133_p13), %v634_v5, %v633_v4  ;;  %v640_v12 = vadd.f32 (!%p2133_p13), %v637_v7, %v634_v5  ;;  %v641_v13 = vadd.f32 (!%p2133_p13), %v638_v10, %v635_v9  ;;  %v2134_v17 = vld [vmem:[#allocation10] ss:$0 sm:$0xff] (!%p2133_p13)  ;;  %s2959_s11 = smov (!%p2133_p13), 72   ;;  %s2960_s3 = smov (!%p2133_p13), 80  }
 0x123   : > { %v723_v14 = vpack.c.bf16 (!%p2133_p13), %v635_v9, %v635_v9  ;;  %s2961_s16 = smov (!%p2133_p13), 104  }
 0x124   : > { %2262 = vmatpush3.bf16.msra.mxu0 (!%p2133_p13), %v2566_v2  ;;  %2271 = vmatprep.mubr.msk.bf16.mxu1 (!%p2133_p13), %vm667_vm0, %v722_v11  ;;  %v642_v15 = vpack.c.bf16 (!%p2133_p13), %v640_v12, %v639_v8  ;;  %v643_v16 = vpack.c.bf16 (!%p2133_p13), %v641_v13, %v641_v13 }
 0x125   : > { %2270 = vmatpush3.bf16.msra.mxu1 (!%p2133_p13), %v2567_v3 }
 0x126   : > { %2263 = vmatprep.mubr.msk.bf16.mxu0 %vm667_vm0, %v642_v15 }
 0x127   : > { %2264 = vmatmul.mubr.msk.bf16.vlgmr.msra.gmra.mrb[0].mxu0 %vm667_vm0, %v643_v16 }
 0x128   : > { %2272 = vmatmul.mubr.msk.bf16.vlgmr.msra.gmra.mrb[0].mxu1 %vm667_vm0, %v723_v14 }
 0x1fa   : > { %v2265_v19 = vpop.f32.mrb[0].mxu0 }
 0x1fb   : > { %v2273_v20 = vpop.f32.mrb[0].mxu1  ;;  %v717_v21 = vadd.f32 %v2265_v19, %v2134_v17  ;;  %v708_v22 = vpop.f32.mrb[1].mxu0 }
 0x1fc   : > { %v796_v23 = vadd.f32 %v2273_v20, %v2139_v18  ;;  %v787_v24 = vpop.f32.mrb[1].mxu1  ;;  %v709_v25 = vadd.f32 %v2134_v17, %v708_v22  ;;  %v2266_v26 = vpop.f32.mrb[2].mxu0 }
 0x1fd   : > { %v788_v27 = vadd.f32 %v2139_v18, %v787_v24  ;;  %v2274_v28 = vpop.f32.mrb[2].mxu1  ;;  %v803_v29 = vmul.f32 0.35355338, %v717_v21  ;;  %v2207_v30 = vpack.c.bf16 %v717_v21, %v717_v21  ;;  %v711_v32 = vpop.f32.mrb[3].mxu0 }
 0x1fe   : > { %v2210_v31 = vpack.c.bf16 %v796_v23, %v796_v23  ;;  %v790_v33 = vpop.f32.mrb[3].mxu1  ;;  %v801_v34 = vmul.f32 0.35355338, %v709_v25  ;;  %v712_v36 = vadd.f32 %v2134_v17, %v711_v32  ;;  %v2205_v43 = vpack.c.bf16 %v709_v25, %v709_v25 }
 0x1ff   : > { %v2208_v35 = vpack.c.bf16 %v788_v27, %v788_v27  ;;  %v2204_v37 = vpack.c.bf16 %v803_v29, %v803_v29  ;;  %v791_v38 = vadd.f32 %v2139_v18, %v790_v33  ;;  %876 = vrot.lane.b32.xlu0 %v2207_v30, %s2955_s18  ;;  %837 = vrot.lane.b32.xlu1 %v2207_v30, %s2956_s9 }
 0x200   : > { %858 = vst.msk [vmem:[#allocation4 + $0x8] sm:$0xf] %vm821_vm1, %v2210_v31  ;;  %v2202_v39 = vpack.c.bf16 %v801_v34, %v801_v34  ;;  %v802_v40 = vmul.f32 0.35355338, %v712_v36  ;;  %v2206_v44 = vpack.c.bf16 %v712_v36, %v712_v36 }
 0x201   : > { %856 = vst.msk [vmem:[#allocation4] sm:$0xf] %vm821_vm1, %v2208_v35  ;;  %824 = vst.msk [vmem:[#allocation2 + $0x8] sm:$0xf] %vm821_vm1, %v2204_v37  ;;  %v2209_v41 = vpack.c.bf16 %v791_v38, %v791_v38 }
 0x202   : > { %822 = vst.msk [vmem:[#allocation2] sm:$0xf] %vm821_vm1, %v2202_v39  ;;  %v2203_v42 = vpack.c.bf16 %v802_v40, %v802_v40 }
 0x203   : > { %857 = vst.msk [vmem:[#allocation4 + $0x4] sm:$0xf] %vm821_vm1, %v2209_v41  ;;  %928 = vrot.lane.b32.xlu0 %v2210_v31, %s2957_s10  ;;  %889 = vrot.lane.b32.xlu1 %v2210_v31, %s2958_s24 }
 0x204   : > { %823 = vst.msk [vmem:[#allocation2 + $0x4] sm:$0xf] %vm821_vm1, %v2203_v42 }
 0x207   : > { %954 = vrot.lane.b32.xlu0 %v2207_v30, %s2959_s11  ;;  %915 = vrot.lane.b32.xlu1 %v2207_v30, %s2960_s3 }
 0x20b   : > { %885 = vrot.lane.b32.xlu1 %v2208_v35, %s2958_s24  ;;  %833 = vrot.lane.b32.xlu0 %v2205_v43, %s2956_s9 }
 0x20f   : > { %911 = vrot.lane.b32.xlu1 %v2205_v43, %s2960_s3  ;;  %872 = vrot.lane.b32.xlu0 %v2205_v43, %s2955_s18 }
 0x213   : > { %963 = vrot.lane.b32.xlu1 %v2208_v35, %s2961_s16  ;;  %924 = vrot.lane.b32.xlu0 %v2208_v35, %s2957_s10 }
 0x217   : > { %863 = vrot.lane.b32.xlu1 %v2204_v37, %s2958_s24  ;;  %950 = vrot.lane.b32.xlu0 %v2205_v43, %s2959_s11 }
 0x21b   : > { %941 = vrot.lane.b32.xlu1 %v2204_v37, %s2961_s16  ;;  %902 = vrot.lane.b32.xlu0 %v2204_v37, %s2957_s10 }
 0x21f   : > { %835 = vrot.lane.b32.xlu0 %v2206_v44, %s2956_s9  ;;  %859 = vrot.lane.b32.xlu1 %v2202_v39, %s2958_s24 }
 0x223   : > { %887 = vrot.lane.b32.xlu0 %v2209_v41, %s2958_s24  ;;  %874 = vrot.lane.b32.xlu1 %v2206_v44, %s2955_s18 }
 0x227   : > { %898 = vrot.lane.b32.xlu0 %v2202_v39, %s2957_s10  ;;  %926 = vrot.lane.b32.xlu1 %v2209_v41, %s2957_s10 }
 0x22b   : > { %913 = vrot.lane.b32.xlu0 %v2206_v44, %s2960_s3  ;;  %937 = vrot.lane.b32.xlu1 %v2202_v39, %s2961_s16 }
 0x22f   : > { %861 = vrot.lane.b32.xlu0 %v2203_v42, %s2958_s24  ;;  %952 = vrot.lane.b32.xlu1 %v2206_v44, %s2959_s11 }
 0x233   : > { %939 = vrot.lane.b32.xlu0 %v2203_v42, %s2961_s16  ;;  %900 = vrot.lane.b32.xlu1 %v2203_v42, %s2957_s10 }
 0x237   : > { %965 = vrot.lane.b32.xlu0 %v2209_v41, %s2961_s16  ;;  %967 = vrot.lane.b32.xlu1 %v2210_v31, %s2961_s16 }
 0x271   : > { %v877_v45 = vpop.permute.xlu0 %876  ;;  %v838_v46 = vpop.permute.xlu1 %837 }
 0x272   : > { %884 = vst.msk [vmem:[#allocation3 + $0x14] sm:$0xf] %vm821_vm1, %v877_v45  ;;  %844 = vst.msk [vmem:[#allocation3 + $0x8] sm:$0xf] %vm821_vm1, %v838_v46 }
 0x275   : > { %v929_v47 = vpop.permute.xlu0 %928  ;;  %v890_v48 = vpop.permute.xlu1 %889 }
 0x276   : > { %936 = vst.msk [vmem:[#allocation4 + $0x20] sm:$0xf] %vm821_vm1, %v929_v47  ;;  %897 = vst.msk [vmem:[#allocation4 + $0x14] sm:$0xf] %vm821_vm1, %v890_v48 }
 0x279   : > { %v955_v49 = vpop.permute.xlu0 %954  ;;  %v916_v50 = vpop.permute.xlu1 %915 }
 0x27a   : > { %962 = vst.msk [vmem:[#allocation3 + $0x2c] sm:$0xf] %vm821_vm1, %v955_v49  ;;  %923 = vst.msk [vmem:[#allocation3 + $0x20] sm:$0xf] %vm821_vm1, %v916_v50 }
 0x27d   : > { %v886_v51 = vpop.permute.xlu1 %885  ;;  %v834_v52 = vpop.permute.xlu0 %833 }
 0x27e   : > { %895 = vst.msk [vmem:[#allocation4 + $0xc] sm:$0xf] %vm821_vm1, %v886_v51  ;;  %842 = vst.msk [vmem:[#allocation3] sm:$0xf] %vm821_vm1, %v834_v52 }
 0x281   : > { %v912_v53 = vpop.permute.xlu1 %911  ;;  %v873_v54 = vpop.permute.xlu0 %872 }
 0x282   : > { %921 = vst.msk [vmem:[#allocation3 + $0x18] sm:$0xf] %vm821_vm1, %v912_v53  ;;  %882 = vst.msk [vmem:[#allocation3 + $0xc] sm:$0xf] %vm821_vm1, %v873_v54 }
 0x285   : > { %v964_v55 = vpop.permute.xlu1 %963  ;;  %v925_v56 = vpop.permute.xlu0 %924 }
 0x286   : > { %973 = vst.msk [vmem:[#allocation4 + $0x24] sm:$0xf] %vm821_vm1, %v964_v55  ;;  %934 = vst.msk [vmem:[#allocation4 + $0x18] sm:$0xf] %vm821_vm1, %v925_v56 }
 0x289   : > { %v864_v57 = vpop.permute.xlu1 %863  ;;  %v951_v58 = vpop.permute.xlu0 %950 }
 0x28a   : > { %871 = vst.msk [vmem:[#allocation2 + $0x14] sm:$0xf] %vm821_vm1, %v864_v57  ;;  %960 = vst.msk [vmem:[#allocation3 + $0x24] sm:$0xf] %vm821_vm1, %v951_v58 }
 0x28d   : > { %v942_v59 = vpop.permute.xlu1 %941  ;;  %v903_v60 = vpop.permute.xlu0 %902 }
 0x28e   : > { %949 = vst.msk [vmem:[#allocation2 + $0x2c] sm:$0xf] %vm821_vm1, %v942_v59  ;;  %910 = vst.msk [vmem:[#allocation2 + $0x20] sm:$0xf] %vm821_vm1, %v903_v60 }
 0x291   : > { %v836_v61 = vpop.permute.xlu0 %835  ;;  %v860_v62 = vpop.permute.xlu1 %859 }
 0x292   : > { %843 = vst.msk [vmem:[#allocation3 + $0x4] sm:$0xf] %vm821_vm1, %v836_v61  ;;  %869 = vst.msk [vmem:[#allocation2 + $0xc] sm:$0xf] %vm821_vm1, %v860_v62 }
 0x295   : > { %v888_v63 = vpop.permute.xlu0 %887  ;;  %v875_v0 = vpop.permute.xlu1 %874 }
 0x296   : > { %896 = vst.msk [vmem:[#allocation4 + $0x10] sm:$0xf] %vm821_vm1, %v888_v63  ;;  %883 = vst.msk [vmem:[#allocation3 + $0x10] sm:$0xf] %vm821_vm1, %v875_v0 }
 0x299   : > { %v899_v1 = vpop.permute.xlu0 %898  ;;  %v927_v2 = vpop.permute.xlu1 %926 }
 0x29a   : > { %908 = vst.msk [vmem:[#allocation2 + $0x18] sm:$0xf] %vm821_vm1, %v899_v1  ;;  %935 = vst.msk [vmem:[#allocation4 + $0x1c] sm:$0xf] %vm821_vm1, %v927_v2 }
 0x29d   : > { %v914_v3 = vpop.permute.xlu0 %913  ;;  %v938_v4 = vpop.permute.xlu1 %937 }
 0x29e   : > { %922 = vst.msk [vmem:[#allocation3 + $0x1c] sm:$0xf] %vm821_vm1, %v914_v3  ;;  %947 = vst.msk [vmem:[#allocation2 + $0x24] sm:$0xf] %vm821_vm1, %v938_v4 }
 0x2a1   : > { %v862_v5 = vpop.permute.xlu0 %861  ;;  %v953_v6 = vpop.permute.xlu1 %952 }
 0x2a2   : > { %870 = vst.msk [vmem:[#allocation2 + $0x10] sm:$0xf] %vm821_vm1, %v862_v5  ;;  %961 = vst.msk [vmem:[#allocation3 + $0x28] sm:$0xf] %vm821_vm1, %v953_v6 }
 0x2a5   : > { %v940_v7 = vpop.permute.xlu0 %939  ;;  %v901_v8 = vpop.permute.xlu1 %900 }
 0x2a6   : > { %948 = vst.msk [vmem:[#allocation2 + $0x28] sm:$0xf] %vm821_vm1, %v940_v7  ;;  %909 = vst.msk [vmem:[#allocation2 + $0x1c] sm:$0xf] %vm821_vm1, %v901_v8 }
 0x2a9   : > { %v966_v9 = vpop.permute.xlu0 %965  ;;  %v968_v10 = vpop.permute.xlu1 %967 }
 0x2aa   : > { %974 = vst.msk [vmem:[#allocation4 + $0x28] sm:$0xf] %vm821_vm1, %v966_v9  ;;  %975 = vst.msk [vmem:[#allocation4 + $0x2c] sm:$0xf] %vm821_vm1, %v968_v10 }
 0x2ab PF: > { %v2568_v11 = vld [vmem:[#allocation3] sm:$0xff]   ;;  %s3756_s21 = sld [smem:[#allocation24_spill]]  ;;  %v2962_v12 = vmov 0.0   ;;  %vm1019_vm2 = vcmask 64512   ;;  %v2569_v13 = vld [vmem:[#allocation3 + $0xc] sm:$0xff]   ;;  %vm2963_vm3 = vmmov 0   ;;  %v1240_v32 = vlaneseq }
 0x2ac   : > { %2275 = vmatprep.subr.bf16.mxu0 %v2962_v12  ;;  %2283 = vmatprep.subr.bf16.mxu1 %v2962_v12  ;;  %v1024_v14 = vsel %vm1019_vm2, %v2568_v11, 0  ;;  %v1081_v15 = vsel %vm1019_vm2, %v2569_v13, 0  ;;  %v2570_v16 = vld [vmem:[#allocation3 + $0x8] ss:$0 sps:$4 sm:$0xff]   ;;  %v2571_v17 = vld [vmem:[#allocation3 + $0x14] ss:$0 sps:$4 sm:$0xff]  }
 0x2ad   : > { %2276 = vmatpush3.bf16.xpose.msra.mxu0 %v1024_v14  ;;  %2279 = vmatprep.mubr.msk.bf16.mxu0 %vm2963_vm3, %v2962_v12  ;;  %v2572_v18 = vld [vmem:[#allocation3 + $0x18] sm:$0xff]   ;;  %v2573_v19 = vld [vmem:[#allocation3 + $0x24] sm:$0xff]   ;;  %v1027_v20 = vsel %vm1019_vm2, %v2570_v16, 0  ;;  %v1084_v21 = vsel %vm1019_vm2, %v2571_v17, 0  ;;  %v2574_v26 = vld [vmem:[#allocation3 + $0x20] ss:$0 sps:$4 sm:$0xff]  }
 0x2ae   : > { %2284 = vmatpush3.bf16.xpose.msra.mxu1 %v1081_v15  ;;  %2277 = vmatprep.subr.bf16.mxu0 %v2962_v12  ;;  %v1138_v22 = vsel %vm1019_vm2, %v2572_v18, 0  ;;  %v1195_v23 = vsel %vm1019_vm2, %v2573_v19, 0  ;;  %v2575_v27 = vld [vmem:[#allocation3 + $0x2c] ss:$0 sps:$4 sm:$0xff]   ;;  %v1141_v28 = vsel %vm1019_vm2, %v2574_v26, 0  ;;  %v1241_v33 = vand.u32 127, %v1240_v32 }
 0x2af   : > { %2285 = vmatprep.subr.bf16.mxu1 %v2962_v12  ;;  %2287 = vmatprep.mubr.msk.bf16.mxu1 %vm2963_vm3, %v2962_v12  ;;  %v1198_v29 = vsel %vm1019_vm2, %v2575_v27, 0  ;;  %vm1247_vm5 = vcmask 195584   ;;  %vm1320_vm6 = vcmask 1043456   ;;  %v2579_v27 = vld [vmem:[#allocation4 + $0x14] ss:$0 sps:$4 sm:$0xff]   ;;  %vm1737_vm7 = vcmask 261120  }
 0x2b0   : > { %vm1242_vm4 = vcmp.lt.s32.totalorder %v1241_v33, 20  ;;  %v2580_v33 = vld [vmem:[#allocation4 + $0x18] sm:$0xff]   ;;  %s3757_s24 = sld [smem:[#allocation37_spill]]  ;;  %s3762_s16 = sld [smem:[#allocation38_spill]]  ;;  %vm1870_vm8 = vcmask 523264  }
 0x2b1   : > { %s2153_s0 = sshll.u32 %s3756_s21, 3  ;;  %p3768_p9 = scmp.ne.s32.totalorder %s3746_s15, 0 }
 0x2b2   : > { %s979_s4 = sshra.s32 %s2153_s0, 3  ;;  %s977_s9 = scalar_lea.vmem %s3399_s5, %s2153_s0 }
 0x2b3   : > { %s2154_s29 = sshll.u32 %s979_s4, 2  ;;  %s3765_s0 = sld [smem:[#allocation41_spill]] }
 0x2b4   : > { %s982_s18 = scalar_lea.vmem [#allocation2], %s2154_s29  ;;  %s3759_s29 = sld [smem:[#allocation39_spill]] }
 0x2b5   : > { %2278 = vmatpush3.bf16.xpose.msra.mxu0 %v1027_v20  ;;  %v983_v24 = vld [vmem:[%s982_s18] sm:$0xf]  ;;  %v984_v25 = vld [vmem:[%s982_s18 + $0xc] sm:$0xf]  ;;  %v985_v30 = vld [vmem:[%s982_s18 + $0x18] sm:$0xf] }
 0x2b6   : > { %2286 = vmatpush3.bf16.xpose.msra.mxu1 %v1084_v21  ;;  %2291 = vmatprep.subr.bf16.mxu0 %v2962_v12  ;;  %v986_v31 = vld [vmem:[%s982_s18 + $0x24] sm:$0xf]  ;;  %s3758_s11 = smov %s3757_s24  ;;  %s3763_s18 = sld [smem:[#allocation40_spill]] }
 0x2b7   : > { %2299 = vmatprep.subr.bf16.mxu1 %v2962_v12 }
 0x2bc   : > { %2280 = vmatmul.mubr.msk.bf16.vlgmr.msra.gmra.mrb[0].mxu0 %vm1019_vm2, %v983_v24  ;;  %v2577_v24 = vld [vmem:[#allocation4 + $0x8] ss:$0 sps:$4 sm:$0xff]  }
 0x2bd   : > { %2292 = vmatpush3.bf16.xpose.msra.mxu0 %v1138_v22  ;;  %2288 = vmatmul.mubr.msk.bf16.vlgmr.msra.gmra.mrb[0].mxu1 %vm1019_vm2, %v984_v25  ;;  %v2578_v25 = vld [vmem:[#allocation4 + $0xc] sm:$0xff]   ;;  %v1322_v26 = vsel %vm1320_vm6, %v2577_v24, 0 }
 0x2be   : > { %2300 = vmatpush3.bf16.xpose.msra.mxu1 %v1195_v23  ;;  %2293 = vmatprep.subr.bf16.mxu0 %v2962_v12  ;;  %v2576_v23 = vld [vmem:[#allocation4] sm:$0xff]  }
 0x2bf   : > { %2301 = vmatprep.subr.bf16.mxu1 %v2962_v12  ;;  %2295 = vmatprep.mubr.msk.bf16.mxu0 %vm2963_vm3, %v2962_v12 }
 0x2c0   : > { %2303 = vmatprep.mubr.msk.bf16.mxu1 %vm2963_vm3, %v2962_v12 }
 0x2c5   : > { %2294 = vmatpush3.bf16.xpose.msra.mxu0 %v1141_v28  ;;  %v1377_v28 = vsel %vm1320_vm6, %v2579_v27, 0 }
 0x2c6   : > { %2302 = vmatpush3.bf16.xpose.msra.mxu1 %v1198_v29  ;;  %2307 = vmatprep.subr.bf16.mxu0 %v2962_v12 }
 0x2c7   : > { %2315 = vmatprep.subr.bf16.mxu1 %v2962_v12 }
 0x2cc   : > { %2296 = vmatmul.mubr.msk.bf16.vlgmr.msra.gmra.mrb[4].mxu0 %vm1019_vm2, %v985_v30 }
 0x2cd   : > { %2304 = vmatmul.mubr.msk.bf16.vlgmr.msra.gmra.mrb[4].mxu1 %vm1019_vm2, %v986_v31  ;;  %2311 = vmatprep.mubr.msk.bf16.mxu0 %vm2963_vm3, %v2962_v12 }
 0x2ce   : > { %2319 = vmatprep.mubr.msk.bf16.mxu1 %vm2963_vm3, %v2962_v12  ;;  %2308 = vmatpush3.bf16.msra.mxu0 %v2576_v23 }
 0x2cf   : > { %2309 = vmatprep.subr.bf16.mxu0 %v2962_v12  ;;  %2316 = vmatpush3.bf16.msra.mxu1 %v2578_v25 }
 0x2d0   : > { %2317 = vmatprep.subr.bf16.mxu1 %v2962_v12 }
 0x2d2   : > { %2310 = vmatpush3.bf16.msra.mxu0 %v1322_v26 }
 0x2d3   : > { %2323 = vmatprep.subr.bf16.mxu0 %v2962_v12  ;;  %2318 = vmatpush3.bf16.msra.mxu1 %v1377_v28 }
 0x2d4   : > { %2331 = vmatprep.subr.bf16.mxu1 %v2962_v12 }
 0x38f   : > { %v1063_v34 = vpop.f32.mrb[0].mxu0 }
 0x390   : > { %v1243_v35 = vsel %vm1242_vm4, %v1063_v34, -1e+30  ;;  %v2281_v36 = vpop.f32.mrb[1].mxu0  ;;  %v1120_v37 = vpop.f32.mrb[0].mxu1 }
 0x391   : > { %v1066_v38 = vpop.f32.mrb[2].mxu0  ;;  %v1244_v39 = vsel %vm1242_vm4, %v1120_v37, -1e+30  ;;  %v2289_v40 = vpop.f32.mrb[1].mxu1  ;;  %v1248_v41 = vsel %vm1247_vm5, %v1243_v35, -inf }
 0x392   : > { %1249 = vmax.xlane.f32.xlu0 %v1248_v41  ;;  %v2282_v42 = vpop.f32.mrb[3].mxu0  ;;  %v1123_v43 = vpop.f32.mrb[2].mxu1  ;;  %v1251_v45 = vsel %vm1247_vm5, %v1244_v39, -inf }
 0x393   : > { %v2290_v44 = vpop.f32.mrb[3].mxu1  ;;  %v2583_v42 = vld [vmem:[#allocation4 + $0x2c] ss:$0 sps:$4 sm:$0xff]  }
 0x394   : > { %v1487_v44 = vsel %vm1320_vm6, %v2583_v42, 0 }
 0x396   : > { %1252 = vmax.xlane.f32.xlu0 %v1251_v45 }
 0x39f   : > { %v1177_v46 = vpop.f32.mrb[4].mxu0 }
 0x3a0   : > { %v1245_v47 = vsel %vm1242_vm4, %v1177_v46, -1e+30  ;;  %v2297_v48 = vpop.f32.mrb[5].mxu0  ;;  %v1234_v49 = vpop.f32.mrb[4].mxu1 }
 0x3a1   : > { %v1246_v50 = vsel %vm1242_vm4, %v1234_v49, -1e+30  ;;  %v1180_v51 = vpop.f32.mrb[6].mxu0  ;;  %v2305_v52 = vpop.f32.mrb[5].mxu1  ;;  %v1254_v53 = vsel %vm1247_vm5, %v1245_v47, -inf }
 0x3a2   : > { %v1237_v54 = vpop.f32.mrb[6].mxu1  ;;  %1255 = vmax.xlane.f32.xlu1 %v1254_v53  ;;  %v2298_v55 = vpop.f32.mrb[7].mxu0  ;;  %v1257_v57 = vsel %vm1247_vm5, %v1246_v50, -inf  ;;  %v1533_v51 = vld [vmem:[#allocation14] sm:$0xf] }
 0x3a3   : > { %v2306_v56 = vpop.f32.mrb[7].mxu1  ;;  %v1586_v52 = vsel %vm1320_vm6, %v1533_v51, 0  ;;  %v1535_v53 = vld [vmem:[#allocation14 + $0x4] sm:$0xf]  ;;  %v1678_v55 = vld [vmem:[#allocation14 + $0xc] sm:$0xf] }
 0x3a4   : > { %v1540_v54 = vsel %vm1320_vm6, %v1535_v53, 0 }
 0x3a6   : > { %1258 = vmax.xlane.f32.xlu1 %v1257_v57 }
 0x41f   : > { %v1250_v58 = vpop.xlane.xlu0 %1249 }
 0x420   : > { %v1260_v59 = vsub.f32 %v1243_v35, %v1250_v58  ;;  %v2582_v35 = vld [vmem:[#allocation4 + $0x20] ss:$0 sps:$4 sm:$0xff]  }
 0x421   : > { %v1432_v41 = vsel %vm1320_vm6, %v2582_v35, 0  ;;  %v978_v35 = vld [vmem:[%s977_s9] sm:$0xff]  ;;  %s3764_s9 = sld [smem:[#allocation25_spill]] }
 0x422   : > { %v1264_v60 = vpack.c.bf16 %v1260_v59, %v1260_v59  ;;  %v1683_v59 = vsel %vm1320_vm6, %v1678_v55, 0 }
 0x423   : > { %v1253_v61 = vpop.xlane.xlu0 %1252 }
 0x424   : > { %v1269_v62 = vmul.bf16 1069105081, %v1264_v60  ;;  %v1261_v63 = vsub.f32 %v1244_v39, %v1253_v61  ;;  %v2581_v39 = vld [vmem:[#allocation4 + $0x24] sm:$0xff]   ;;  %v1629_v61 = vld [vmem:[#allocation14 + $0x8] sm:$0xf] }
 0x426   : > { %2590 = vpow.bf16 %v1269_v62  ;;  %v1265_v0 = vpack.c.bf16 %v1261_v63, %v1261_v63 }
 0x427   : > { %s2387_s5 = smul.u32 3, %s3764_s9  ;;  %s3766_s9 = sld [smem:[#allocation42_spill]] }
 0x428   : > { %v1272_v1 = vmul.bf16 1069105081, %v1265_v0 }
 0x429   : > { %s1953_s10 = sadd.s32 %s3756_s21, %s2387_s5  ;;  %s3767_s21 = sand.u32 1, %s2906_s19  }
 0x42a   : > { %2592 = vpow.bf16 %v1272_v1  ;;  %s2199_s28 = sshll.u32 %s1953_s10, 7  ;;  %s1942_s5 = scalar_lea.sflag [#allocation7], %s3767_s21 }
 0x42f   : > { %v1256_v2 = vpop.xlane.xlu1 %1255 }
 0x430   : > { %v1262_v3 = vsub.f32 %v1245_v47, %v1256_v2  ;;  %v1634_v2 = vsel %vm1320_vm6, %v1629_v61, 0  ;;  %v2186_v61 = vld [vmem:[%s3762_s16] ss:$0 sm:$0xff] }
 0x431   : > { %v2591_v4 = vpop.eup %2590 }
 0x432   : > { %v1266_v5 = vpack.c.bf16 %v1262_v3, %v1262_v3  ;;  %v1280_v6 = vunpack.c.l.bf16 %v2591_v4 }
 0x433   : > { %v1259_v7 = vpop.xlane.xlu1 %1258 }
 0x434   : > { %v1275_v8 = vmul.bf16 1069105081, %v1266_v5  ;;  %v1263_v9 = vsub.f32 %v1246_v50, %v1259_v7  ;;  %v1284_v10 = vsel %vm1247_vm5, %v1280_v6, 0.0 }
 0x435   : > { %v2593_v11 = vpop.eup %2592  ;;  %1285 = vadd.xlane.f32.xlu0 %v1284_v10 }
 0x436   : > { %2594 = vpow.bf16 %v1275_v8  ;;  %v1267_v13 = vpack.c.bf16 %v1263_v9, %v1263_v9  ;;  %v1281_v14 = vunpack.c.l.bf16 %v2593_v11 }
 0x438   : > { %v1278_v15 = vmul.bf16 1069105081, %v1267_v13  ;;  %v1287_v16 = vsel %vm1247_vm5, %v1281_v14, 0.0 }
 0x439   : > { %1288 = vadd.xlane.f32.xlu1 %v1287_v16 }
 0x43a   : > { %2596 = vpow.bf16 %v1278_v15 }
 0x441   : > { %v2595_v17 = vpop.eup %2594 }
 0x442   : > { %v1282_v18 = vunpack.c.l.bf16 %v2595_v17 }
 0x444   : > { %v1290_v19 = vsel %vm1247_vm5, %v1282_v18, 0.0 }
 0x445   : > { %v2597_v20 = vpop.eup %2596  ;;  %1291 = vadd.xlane.f32.xlu0 %v1290_v19 }
 0x446   : > { %v1283_v21 = vunpack.c.l.bf16 %v2597_v20 }
 0x448   : > { %v1293_v22 = vsel %vm1247_vm5, %v1283_v21, 0.0 }
 0x449   : > { %1294 = vadd.xlane.f32.xlu1 %v1293_v22 }
 0x4c2   : > { %v1286_v29 = vpop.xlane.xlu0 %1285 }
 0x4c3   : > { %2598 = vrcp.f32 %v1286_v29 }
 0x4c6   : > { %v1289_v30 = vpop.xlane.xlu1 %1288 }
 0x4c7   : > { %2600 = vrcp.f32 %v1289_v30 }
 0x4cd   : > { %v2599_v31 = vpop.eup %2598 }
 0x4ce   : > { %v1300_v32 = vpack.c.bf16 %v2599_v31, %v2599_v31  ;;  %v2183_v31 = vld [vmem:[#allocation16] ss:$0 sm:$0xff] }
 0x4d0   : > { %v1304_v34 = vmul.bf16 %v2591_v4, %v1300_v32 }
 0x4d1   : > { %v2601_v36 = vpop.eup %2600 }
 0x4d2   : > { %v1301_v37 = vpack.c.bf16 %v2601_v36, %v2601_v36  ;;  %2312 = vmatmul.mubr.msk.bf16.vlgmr.msra.gmra.mrb[8].mxu0 %vm1247_vm5, %v1304_v34  ;;  %v1292_v38 = vpop.xlane.xlu0 %1291 }
 0x4d3   : > { %2602 = vrcp.f32 %v1292_v38  ;;  %2324 = vmatpush3.bf16.msra.mxu0 %v2580_v33  ;;  %2327 = vmatprep.mubr.msk.bf16.mxu0 %vm2963_vm3, %v2962_v12 }
 0x4d4   : > { %v1305_v40 = vmul.bf16 %v2593_v11, %v1301_v37  ;;  %2325 = vmatprep.subr.bf16.mxu0 %v2962_v12 }
 0x4d6   : > { %2320 = vmatmul.mubr.msk.bf16.vlgmr.msra.gmra.mrb[8].mxu1 %vm1247_vm5, %v1305_v40  ;;  %v1295_v43 = vpop.xlane.xlu1 %1294 }
 0x4d7   : > { %2604 = vrcp.f32 %v1295_v43  ;;  %2332 = vmatpush3.bf16.msra.mxu1 %v2581_v39  ;;  %2326 = vmatpush3.bf16.msra.mxu0 %v1432_v41 }
 0x4d8   : > { %2333 = vmatprep.subr.bf16.mxu1 %v2962_v12  ;;  %2335 = vmatprep.mubr.msk.bf16.mxu1 %vm2963_vm3, %v2962_v12 }
 0x4d9   : > { %2339 = vmatprep.subr.bf16.mxu0 %v2962_v12 }
 0x4db   : > { %2334 = vmatpush3.bf16.msra.mxu1 %v1487_v44 }
 0x4dc   : > { %2345 = vmatprep.subr.bf16.mxu1 %v2962_v12 }
 0x4dd   : > { %v2603_v45 = vpop.eup %2602 }
 0x4de   : > { %v1302_v46 = vpack.c.bf16 %v2603_v45, %v2603_v45  ;;  %v2584_v45 = vld [vmem:[%s3757_s24] sm:$0xff]   ;;  %s3760_s24 = sld [smem:[#allocation36_spill]] }
 0x4e0   : > { %v1306_v47 = vmul.bf16 %v2595_v17, %v1302_v46  ;;  %v2585_v46 = vld [vmem:[%s3758_s11 + $0x8] sm:$0xff]   ;;  %s3609_s11 = scalar_lea.hbm %s3766_s9, %s2199_s28 }
 0x4e1   : > { %v2605_v48 = vpop.eup %2604 }
 0x4e2   : > { %v1303_v49 = vpack.c.bf16 %v2605_v48, %v2605_v48  ;;  %2328 = vmatmul.mubr.msk.bf16.vlgmr.msra.gmra.mrb[12].mxu0 %vm1247_vm5, %v1306_v47  ;;  %v2586_v47 = vld [vmem:[%s3759_s29] sm:$0xff]   ;;  %v2587_v48 = vld [vmem:[%s3759_s29 + $0x8] sm:$0xff]  }
 0x4e3   : > { %2341 = vmatprep.mubr.msk.bf16.mxu0 %vm2963_vm3, %v2962_v12  ;;  %2340 = vmatpush3.bf16.msra.mxu0 %v1540_v54 }
 0x4e4   : > { %v1307_v50 = vmul.bf16 %v2597_v20, %v1303_v49  ;;  %2351 = vmatprep.subr.bf16.mxu0 %v2962_v12  ;;  %s3761_s3 = smov %s3760_s24  ;;  %v2184_v53 = vld [vmem:[%s3760_s24] ss:$0 sm:$0xff]  ;;  %s2964_s24 = smov [#allocation17]  }
 0x4e5   : > { %v2185_v55 = vld [vmem:[%s3761_s3 + $0x1] ss:$0 sm:$0xff]  ;;  %s1957_s3 = sshll.u32 %s622_s2, 4  ;;  %s2812_s16 = sshll.u32 %s2964_s24, 4  ;;  %s3611_s3 = int_to_ptr.vmem [resolvable:$true] %s1957_s3  ;;  %s2813_s16 = int_to_ptr.vmem [resolvable:$false] %s2812_s16 }
 0x4e6   : > { %2336 = vmatmul.mubr.msk.bf16.vlgmr.msra.gmra.mrb[12].mxu1 %vm1247_vm5, %v1307_v50  ;;  %s2808_s10 = scalar_lea.vmem %s3611_s3, 128  ;;  %s2814_s6 = scalar_lea.vmem %s2813_s16, 256 }
 0x4e7   : > { %2347 = vmatprep.mubr.msk.bf16.mxu1 %vm2963_vm3, %v2962_v12  ;;  %2346 = vmatpush3.bf16.msra.mxu1 %v1586_v52  ;;  %p2809_p6 = scmp.ne.s32.totalorder %s3611_s3, %s2808_s10  ;;  %p2815_p0 = scmp.lt.s32.totalorder %s3611_s3, %s2813_s16 }
 0x4e8   : > { %2357 = vmatprep.subr.bf16.mxu1 %v2962_v12  ;;  %p2816_p1 = scmp.lt.s32.totalorder %s2814_s6, %s2808_s10 }
 0x4e9   : > { %p2810_p11 = pnand %p2809_p6, %p3768_p9 }
 0x4ea   : > { %p2817_p7 = por %p2816_p1, %p2815_p0 }
 0x4eb   : > { %p2811_p12 = pneg %p2810_p11 }
 0x4ed   : > { %p2818_p3 = pnand %p2817_p7, %p2811_p12 }
 0x5a5   : > { %v1358_v56 = vpop.f32.mrb[8].mxu0 }
 0x5a6   : > { %v1529_v57 = vpack.c.bf16 %v1358_v56, %v1358_v56  ;;  %v2313_v58 = vpop.f32.mrb[9].mxu0 }
 0x5a7   : > { %v1361_v60 = vpop.f32.mrb[10].mxu0 }
 0x5a8   : > { %v2314_v62 = vpop.f32.mrb[11].mxu0  ;;  %2348 = vmatmul.mubr.msk.bf16.vlgmr.msra.gmra.mrb[16].mxu1 %vm1019_vm2, %v1529_v57  ;;  %v2589_v60 = vld [vmem:[%s3759_s29 + $0x18] sm:$0xff]  }
 0x5a9   : > { %v1413_v63 = vpop.f32.mrb[8].mxu1  ;;  %2358 = vmatpush3.bf16.msra.mxu1 %v1683_v59  ;;  %2359 = vmatprep.mubr.msk.bf16.mxu1 %vm2963_vm3, %v2962_v12  ;;  %v2588_v59 = vld [vmem:[%s3759_s29 + $0x10] sm:$0xff]  }
 0x5aa   : > { %v1530_v0 = vpack.c.bf16 %v1413_v63, %v1413_v63  ;;  %v2321_v1 = vpop.f32.mrb[9].mxu1  ;;  %2371 = vmatprep.subr.bf16.mxu1 %v2962_v12 }
 0x5ab   : > { %v1416_v3 = vpop.f32.mrb[10].mxu1 }
 0x5ac   : > { %v2322_v4 = vpop.f32.mrb[11].mxu1  ;;  %2342 = vmatmul.mubr.msk.bf16.vlgmr.msra.gmra.mrb[16].mxu0 %vm1019_vm2, %v1530_v0 }
 0x5ad   : > { %2352 = vmatpush3.bf16.msra.mxu0 %v1634_v2  ;;  %2353 = vmatprep.mubr.msk.bf16.mxu0 %vm2963_vm3, %v2962_v12 }
 0x5ae   : > { %2363 = vmatprep.subr.bf16.mxu0 %v2962_v12 }
 0x5b5   : > { %v1468_v5 = vpop.f32.mrb[12].mxu0 }
 0x5b6   : > { %v1531_v6 = vpack.c.bf16 %v1468_v5, %v1468_v5  ;;  %v2329_v7 = vpop.f32.mrb[13].mxu0 }
 0x5b7   : > { %v1471_v8 = vpop.f32.mrb[14].mxu0 }
 0x5b8   : > { %v2330_v9 = vpop.f32.mrb[15].mxu0  ;;  %2354 = vmatmul.mubr.msk.bf16.vlgmr.msra.gmra.mrb[20].mxu0 %vm1019_vm2, %v1531_v6 }
 0x5b9   : > { %v1523_v10 = vpop.f32.mrb[12].mxu1  ;;  %2367 = vmatprep.mubr.msk.bf16.mxu0 %vm2963_vm3, %v2962_v12  ;;  %2364 = vmatpush3.bf16.msra.mxu0 %v2584_v45 }
 0x5ba   : > { %v1532_v11 = vpack.c.bf16 %v1523_v10, %v1523_v10  ;;  %v2337_v13 = vpop.f32.mrb[13].mxu1  ;;  %2365 = vmatprep.subr.bf16.mxu0 %v2962_v12 }
 0x5bb   : > { %v1526_v14 = vpop.f32.mrb[14].mxu1 }
 0x5bc   : > { %v2338_v15 = vpop.f32.mrb[15].mxu1  ;;  %2360 = vmatmul.mubr.msk.bf16.vlgmr.msra.gmra.mrb[20].mxu1 %vm1019_vm2, %v1532_v11 }
 0x5bd   : > { %2379 = vmatprep.mubr.msk.bf16.mxu1 %vm2963_vm3, %v2962_v12  ;;  %2366 = vmatpush3.bf16.msra.mxu0 %v2585_v46 }
 0x5be   : > { %2372 = vmatpush3.bf16.msra.mxu1 %v2586_v47 }
 0x5bf   : > { %2373 = vmatprep.subr.bf16.mxu1 %v2962_v12 }
 0x5c2   : > { %2374 = vmatpush3.bf16.msra.mxu1 %v2587_v48 }
 0x5c3   : > { %2375 = vmatprep.subr.bf16.mxu1 %v2962_v12 }
 0x5c6   : > { %2376 = vmatpush3.bf16.msra.mxu1 %v2588_v59 }
 0x5c7   : > { %2377 = vmatprep.subr.bf16.mxu1 %v2962_v12  ;;  %v2190_v12 = vld [vmem:[%s3763_s18] ss:$0 sm:$0xff] }
 0x5ca   : > { %2378 = vmatpush3.bf16.msra.mxu1 %v2589_v60 }
 0x67b   : > { %v1622_v16 = vpop.f32.mrb[16].mxu1 }
 0x67c   : > { %v2349_v17 = vpop.f32.mrb[17].mxu1 }
 0x67d   : > { %v1625_v18 = vpop.f32.mrb[18].mxu1 }
 0x67e   : > { %v2350_v19 = vpop.f32.mrb[19].mxu1 }
 0x67f   : > { %v1576_v20 = vpop.f32.mrb[16].mxu0 }
 0x680   : > { %v1623_v21 = vadd.f32 %v1622_v16, %v1576_v20  ;;  %v2343_v22 = vpop.f32.mrb[17].mxu0 }
 0x681   : > { %v1579_v23 = vpop.f32.mrb[18].mxu0  ;;  %v2196_v22 = vld [vmem:[%s3765_s0] ss:$0 sm:$0xff] }
 0x682   : > { %v2344_v24 = vpop.f32.mrb[19].mxu0 }
 0x683   : > { %v2197_v24 = vld [vmem:[%s3765_s0 + $0x1] ss:$0 sm:$0xff] }
 0x68b   : > { %v1670_v25 = vpop.f32.mrb[20].mxu0 }
 0x68c   : > { %v1676_v26 = vadd.f32 %v1670_v25, %v1623_v21  ;;  %v2355_v27 = vpop.f32.mrb[21].mxu0 }
 0x68d   : > { %v1673_v28 = vpop.f32.mrb[22].mxu0 }
 0x68e   : > { %v2356_v29 = vpop.f32.mrb[23].mxu0 }
 0x68f   : > { %v1719_v30 = vpop.f32.mrb[20].mxu1 }
 0x690   : > { %v1725_v32 = vadd.f32 %v1719_v30, %v1676_v26  ;;  %v2361_v33 = vpop.f32.mrb[21].mxu1 }
 0x691   : > { %v1722_v34 = vpop.f32.mrb[22].mxu1 }
 0x692   : > { %v1733_v36 = vadd.f32 %v2183_v31, %v1725_v32  ;;  %v2362_v37 = vpop.f32.mrb[23].mxu1 }
 0x694   : > { %v1734_v38 = vadd.f32 %v1733_v36, %v978_v35 }
 0x696   : > { %v1738_v39 = vsel %vm1737_vm7, %v1734_v38, 0.0 }
 0x697   : > { %1739 = vadd.xlane.f32.xlu0 %v1738_v39 }
 0x724   : > { %v1740_v40 = vpop.xlane.xlu0 %1739 }
 0x725   : > { %v1742_v41 = vmul.f32 0.03125, %v1740_v40 }
 0x727   : > { %v1743_v42 = vsub.f32 %v1734_v38, %v1742_v41 }
 0x729   : > { %v1744_v43 = vmul.f32 %v1743_v42, %v1743_v42 }
 0x72b   : > { %v1745_v44 = vsel %vm1737_vm7, %v1744_v43, 0.0 }
 0x72c   : > { %1746 = vadd.xlane.f32.xlu1 %v1745_v44 }
 0x7b9   : > { %v1747_v49 = vpop.xlane.xlu1 %1746 }
 0x7ba   : > { %v1748_v50 = vmul.f32 0.03125, %v1747_v49 }
 0x7bc   : > { %v1749_v51 = vadd.f32 1e-05, %v1748_v50 }
 0x7be   : > { %2606 = vrsqrt.f32 %v1749_v51 }
 0x7c8   : > { %v2607_v52 = vpop.eup %2606 }
 0x7c9   : > { %v1751_v54 = vmul.f32 %v2607_v52, %v1743_v42 }
 0x7cb   : > { %v1756_v56 = vmul.f32 %v2184_v53, %v1751_v54 }
 0x7cd   : > { %v1761_v57 = vadd.f32 %v2185_v55, %v1756_v56 }
 0x7cf   : > { %v1762_v58 = vpack.c.bf16 %v1761_v57, %v1761_v57 }
 0x7d1   : > { %2368 = vmatmul.mubr.msk.bf16.vlgmr.msra.gmra.mrb[24].mxu0 %vm1737_vm7, %v1762_v58 }
 0x8a4   : > { %v1823_v62 = vpop.f32.mrb[24].mxu0 }
 0x8a5   : > { %v1824_v63 = vadd.f32 %v2186_v61, %v1823_v62  ;;  %v2369_v0 = vpop.f32.mrb[25].mxu0 }
 0x8a6   : > { %v1826_v1 = vpop.f32.mrb[26].mxu0 }
 0x8a7   : > { %v1829_v2 = vmax.f32 %v1824_v63, 0.0  ;;  %v2370_v3 = vpop.f32.mrb[27].mxu0 }
 0x8a9   : > { %v1830_v4 = vpack.c.bf16 %v1829_v2, %v1829_v2 }
 0x8ab   : > { %2380 = vmatmul.mubr.msk.bf16.vlgmr.msra.gmra.mrb[24].mxu1 %vm1870_vm8, %v1830_v4 }
 0x97e   : > { %v1908_v5 = vpop.f32.mrb[24].mxu1 }
 0x97f   : > { %v1909_v6 = vadd.f32 %v2190_v12, %v1908_v5  ;;  %v2381_v7 = vpop.f32.mrb[25].mxu1 }
 0x980   : > { %v1911_v8 = vpop.f32.mrb[26].mxu1 }
 0x981   : > { %v2382_v9 = vpop.f32.mrb[27].mxu1  ;;  %v1914_v10 = vadd.f32 %v1909_v6, %v1761_v57 }
 0x983   : > { %v1917_v11 = vsel %vm1737_vm7, %v1914_v10, 0.0 }
 0x984   : > { %1918 = vadd.xlane.f32.xlu0 %v1917_v11 }
 0xa11   : > { %v1919_v13 = vpop.xlane.xlu0 %1918 }
 0xa12   : > { %v1920_v14 = vmul.f32 0.03125, %v1919_v13 }
 0xa14   : > { %v1921_v15 = vsub.f32 %v1914_v10, %v1920_v14 }
 0xa16   : > { %v1922_v16 = vmul.f32 %v1921_v15, %v1921_v15 }
 0xa18   : > { %v1923_v17 = vsel %vm1737_vm7, %v1922_v16, 0.0 }
 0xa19   : > { %1924 = vadd.xlane.f32.xlu1 %v1923_v17 }
 0xaa6   : > { %v1925_v18 = vpop.xlane.xlu1 %1924 }
 0xaa7   : > { %v1926_v19 = vmul.f32 0.03125, %v1925_v18 }
 0xaa9   : > { %v1927_v20 = vadd.f32 1e-05, %v1926_v19 }
 0xaab   : > { %2608 = vrsqrt.f32 %v1927_v20 }
 0xab5   : > { %v2609_v21 = vpop.eup %2608 }
 0xab6   : > { %v1929_v23 = vmul.f32 %v2609_v21, %v1921_v15 }
 0xab8   : > { %v1934_v25 = vmul.f32 %v2196_v22, %v1929_v23 }
 0xaba   : > { %v1939_v26 = vadd.f32 %v2197_v24, %v1934_v25 }
 0xabc   : > { %1940 = vst.msk [vmem:[%s622_s2] sm:$0xff] %vm1737_vm7, %v1939_v26 }
 0xabd   : > { %2821 = shalt.err (!%p2818_p3)
}
 0xabe   : > { %s2822_s7 = scalar_lea.hbm %s3609_s11, 128  ;;  %s2826_s2 = scalar_lea.hbm %s3766_s9, 768 }
 0xabf   : > { %p2823_p4 = scmp.ne.s32.totalorder %s3609_s11, %s2822_s7  ;;  %p2827_p8 = scmp.lt.u32.totalorder %s3609_s11, %s3766_s9 }
 0xac0   : > { %p2828_p5 = scmp.lt.u32.totalorder %s2826_s2, %s2822_s7  ;;  %p2830_p6 = scmp.lt.u32.totalorder %s2822_s7, %s3609_s11 }
 0xac1   : > { %p2824_p10 = pnand %p2823_p4, %p3768_p9 }
 0xac2   : > { %p2829_p13 = por %p2828_p5, %p2827_p8 }
 0xac3   : > { %p2825_p2 = pneg %p2824_p10 }
 0xac4   : > { %p2831_p11 = por %p2830_p6, %p2829_p13 }
 0xac6   : > { %p2832_p12 = pnand %p2831_p11, %p2825_p2 }
 0xac8   : > { %2835 = shalt.err (!%p2832_p12)
}
 0xac9   : > { %2414 = dma.vmem_to_hbm [thread:$0]  (%p3768_p9), %s3611_s3, 128, %s3609_s11, %s1942_s5  }
 0xaca PF: > { %s3769_s21 = sld [smem:[#allocation23_spill]]  ;;  %p2456_p0 = scmp.ge.s32.totalorder %s2942_s27, 2 }
 0xacb   : > { %p3770_p1 = scmp.ne.s32.totalorder %s3747_s8, 0 }
 0xacd   : > { %p2440_p7 = pnand %p2456_p0, %p3770_p1 }
 0xad0   : > { %s1969_s10 = sand.u32 1, %s3769_s21  }
 0xad1   : > { %s1970_s24 = scalar_lea.sflag [#allocation7], %s1969_s10 }
 0xad2   : > { %2897 = dma.done.wait (!%p2440_p7), %s1970_s24, 128  }
 0xad3   : > { %2899 = vsyncadd (!%p2440_p7), %s1970_s24, 4294967168  ;;  %s34_s27 = sadd.s32 1, %s2942_s27   ;;  %s3771_s18 = smov %s2906_s19 }
 0xad4   : > { %p31_p3 = scmp.ge.s32.totalorder %s34_s27, 8   ;;  %s3772_s19 = smov %s2910_s20 }
 0xad5   : > { %s3773_s20 = smov %s3318_s30  ;;  %s3774_s21 = smov %s2918_s22 }
 0xad6   : > { %s3775_s22 = smov %s2922_s14  ;;  %s3776_s14 = smov %s3315_s23 }
 0xad7   : > { %s3777_s23 = smov %s2934_s25  ;;  %s3778_s24 = smov %s2938_s26 }
 0xad8   : > { %s3779_s25 = smov %s3782_s13  ;;  %s3780_s26 = smov %s3786_s1 }
 0xad9   :  { %33 = sbr.rel (!%p31_p3) target bundleno = 28 (0x1c), region = 170 }
 0xae0   :  { %1975 = vsyncpa [#allocation6], 1 }
 0xae1   :  { %1977 = vsyncpa [#allocation6 + $0x1], 1 }
 0xae2   :  { %1978 = vsyncpa [#allocation9], 1 }
 0xae3   :  { %1979 = vsyncpa [#allocation12], 1 }
 0xae4   :  { %1980 = vsyncpa [#allocation15], 1 }
 0xae5   :  { %1981 = vsyncpa [#allocation7], 1 }
 0xae6   :  { %1983 = vsyncpa [#allocation7 + $0x1], 1 }

</bundles_post_ra>
